<compile_context>
chip_gen: v6e
topology: v6e:2x2x1
jax: 0.10.0
libtpu: 0.0.40
codegen_flags: <defaults>
</compile_context>

<pallas_src>
import jax
import jax.numpy as jnp
from jax.experimental import pallas as pl
from jax.experimental.pallas import tpu as pltpu


# ----------------------------------------------------------------------------
# Pallas kernel: full Conv4-style backbone (2 fused conv blocks) per chunk
# ----------------------------------------------------------------------------
def conv4_backbone_kernel(xpad_ref, w1_ref, b1_ref, w2_ref, b2_ref, o_ref,
                          act1_scr, pad1_scr, act2_scr):
    """Both conv blocks for a chunk of images, entirely in VMEM.

    xpad_ref : (nb, H+2, W+2, Cin)        f32, zero-padded input chunk
    w1_ref   : (9*Cin, C1)                bf16, tap-major, BN scale folded in
    b1_ref   : (1, C1)                    f32, folded BN shift
    w2_ref   : (9*C1, C2)                 bf16
    b2_ref   : (1, C2)                    f32
    o_ref    : (nb, H//4, W//4, C2)       f32, final pooled output
    act1_scr : (nb, H, W, C1)             f32 scratch (pre-pool act, block 1)
    pad1_scr : (nb, H//2+2, W//2+2, C1)   f32 scratch (padded pooled act 1)
    act2_scr : (nb, H//2, W//2, C2)       f32 scratch (pre-pool act, block 2)
    """
    H1, W1 = act1_scr.shape[1], act1_scr.shape[2]
    Ho1, Wo1 = H1 // 2, W1 // 2
    Ho2, Wo2 = Ho1 // 2, Wo1 // 2

    # ---------------- block 1: conv3x3 + BN shift + ReLU -------------------
    # im2col: concatenate the 9 shifted 3x3-tap views on the channel (lane)
    # axis -> a single matmul with K = 9*Cin instead of 9 small dots.
    taps1 = [xpad_ref[:, ky:ky + H1, kx:kx + W1, :]
             for ky in range(3) for kx in range(3)]
    p1 = jnp.concatenate(taps1, axis=-1).astype(jnp.bfloat16)   # (nb,H,W,9*Cin)
    a1 = jnp.einsum("nhwk,ko->nhwo", p1, w1_ref[...],
                    preferred_element_type=jnp.float32)          # f32 acc
    act1_scr[...] = jnp.maximum(a1 + b1_ref[...], 0.0)

    # 2x2 / stride-2 max-pool via strided loads on the in-VMEM activation.
    p00 = act1_scr[:, pl.ds(0, Ho1, 2), pl.ds(0, Wo1, 2), :]
    p01 = act1_scr[:, pl.ds(0, Ho1, 2), pl.ds(1, Wo1, 2), :]
    p10 = act1_scr[:, pl.ds(1, Ho1, 2), pl.ds(0, Wo1, 2), :]
    p11 = act1_scr[:, pl.ds(1, Ho1, 2), pl.ds(1, Wo1, 2), :]
    pool1 = jnp.maximum(jnp.maximum(p00, p01), jnp.maximum(p10, p11))

    # Zero-padded intermediate never leaves VMEM; it directly serves as the
    # im2col source for block 2 (this is the HBM round trip we removed).
    pad1_scr[...] = jnp.zeros_like(pad1_scr)
    pad1_scr[:, 1:1 + Ho1, 1:1 + Wo1, :] = pool1

    # ---------------- block 2: conv3x3 + BN shift + ReLU -------------------
    taps2 = [pad1_scr[:, ky:ky + Ho1, kx:kx + Wo1, :]
             for ky in range(3) for kx in range(3)]
    p2 = jnp.concatenate(taps2, axis=-1).astype(jnp.bfloat16)    # (nb,Ho1,Wo1,9*C1)
    a2 = jnp.einsum("nhwk,ko->nhwo", p2, w2_ref[...],
                    preferred_element_type=jnp.float32)
    act2_scr[...] = jnp.maximum(a2 + b2_ref[...], 0.0)

    q00 = act2_scr[:, pl.ds(0, Ho2, 2), pl.ds(0, Wo2, 2), :]
    q01 = act2_scr[:, pl.ds(0, Ho2, 2), pl.ds(1, Wo2, 2), :]
    q10 = act2_scr[:, pl.ds(1, Ho2, 2), pl.ds(0, Wo2, 2), :]
    q11 = act2_scr[:, pl.ds(1, Ho2, 2), pl.ds(1, Wo2, 2), :]
    o_ref[...] = jnp.maximum(jnp.maximum(q00, q01), jnp.maximum(q10, q11))


# ----------------------------------------------------------------------------
# Host-side glue (pad / BN fold / transposes), all under jax.jit
# ----------------------------------------------------------------------------
def _fold_bn(w_oihw, gamma, beta, running_mean, running_var, eps=1e-5):
    """Fold eval-mode BatchNorm into the conv weight columns + a shift."""
    cout, cin = w_oihw.shape[0], w_oihw.shape[1]
    inv_std = 1.0 / jnp.sqrt(running_var + eps)
    scale = gamma * inv_std                                     # (Cout,)
    shift = beta - running_mean * scale                         # (Cout,)
    # (Cout, Cin, 3, 3) -> (3, 3, Cin, Cout) -> (9*Cin, Cout); tap-major rows
    # (channel innermost) match the im2col concatenation order in the kernel.
    w_mat = jnp.transpose(w_oihw, (2, 3, 1, 0)).reshape(9 * cin, cout)
    w_mat = (w_mat * scale[None, :]).astype(jnp.bfloat16)
    bias = shift.reshape(1, cout).astype(jnp.float32)
    return w_mat, bias


def backbone_forward_nhwc(params, x_nhwc):
    """Whole 2-block backbone as one fused Pallas call. Returns NHWC pooled."""
    assert len(params) == 2, "fused kernel is built for the 2-block backbone"
    N, H, W, Cin = x_nhwc.shape
    assert H % 4 == 0 and W % 4 == 0
    C1 = params[0]["w"].shape[0]
    C2 = params[1]["w"].shape[0]
    Ho1, Wo1 = H // 2, W // 2
    Ho2, Wo2 = Ho1 // 2, Wo1 // 2

    w1, b1 = _fold_bn(params[0]["w"], params[0]["gamma"], params[0]["beta"],
                      params[0]["running_mean"], params[0]["running_var"])
    w2, b2 = _fold_bn(params[1]["w"], params[1]["gamma"], params[1]["beta"],
                      params[1]["running_mean"], params[1]["running_var"])

    xpad = jnp.pad(x_nhwc.astype(jnp.float32),
                   ((0, 0), (1, 1), (1, 1), (0, 0)))

    # Whole batch in at most two grid steps: one "parallel" step per
    # TensorCore on v7x; negligible per-step overhead on v5e/v6e.
    grid_n = 2 if (N >= 2 and N % 2 == 0) else 1
    nb = N // grid_n

    return pl.pallas_call(
        conv4_backbone_kernel,
        out_shape=jax.ShapeDtypeStruct((N, Ho2, Wo2, C2), jnp.float32),
        grid=(grid_n,),
        in_specs=[
            pl.BlockSpec((nb, H + 2, W + 2, Cin), lambda g: (g, 0, 0, 0)),
            pl.BlockSpec((9 * Cin, C1), lambda g: (0, 0)),
            pl.BlockSpec((1, C1), lambda g: (0, 0)),
            pl.BlockSpec((9 * C1, C2), lambda g: (0, 0)),
            pl.BlockSpec((1, C2), lambda g: (0, 0)),
        ],
        out_specs=pl.BlockSpec((nb, Ho2, Wo2, C2), lambda g: (g, 0, 0, 0)),
        scratch_shapes=[
            pltpu.VMEM((nb, H, W, C1), jnp.float32),
            pltpu.VMEM((nb, Ho1 + 2, Wo1 + 2, C1), jnp.float32),
            pltpu.VMEM((nb, Ho1, Wo1, C2), jnp.float32),
        ],
        compiler_params=pltpu.CompilerParams(
            dimension_semantics=("parallel",)),
    )(xpad, w1, b1, w2, b2)


def init_params(key, in_ch=4, hidden=(8, 16)):
    """Deterministic parameter initialization (no checkpoint load)."""
    params = []
    cin = in_ch
    for cout in hidden:
        k_w, k_g, k_b, key = jax.random.split(key, 4)
        params.append(dict(
            w=0.1 * jax.random.normal(k_w, (cout, cin, 3, 3), jnp.float32),
            gamma=1.0 + 0.05 * jax.random.normal(k_g, (cout,), jnp.float32),
            beta=0.05 * jax.random.normal(k_b, (cout,), jnp.float32),
            running_mean=jnp.zeros((cout,), jnp.float32),
            running_var=jnp.ones((cout,), jnp.float32),
        ))
        cin = cout
    return params


@jax.jit
def feature_forward(params, x_nchw):
    """Conv4-style backbone forward.  Returns (N, final_feat_dim)."""
    x = jnp.transpose(x_nchw, (0, 2, 3, 1))          # NCHW -> NHWC
    y = backbone_forward_nhwc(params, x)              # one fused Pallas call
    # NHWC -> NCHW so the flatten ordering matches PyTorch's x.view(N, -1).
    y = jnp.transpose(y, (0, 3, 1, 2))
    return y.reshape(y.shape[0], -1)


class MetaTemplate:
    """JAX/Pallas port of MetaTemplate: forward(x) = self.feature.forward(x)."""

    def __init__(self, params, n_way=2, n_support=3, change_way=True):
        self.params = params
        self.n_way = n_way
        self.n_support = n_support
        self.n_query = -1
        self.change_way = change_way
        # final_feat_dim for in_ch=4, 16x16 input, hidden=(8,16): 16*4*4 = 256
        self.feat_dim = None

    def forward(self, x):
        out = feature_forward(self.params, x)
        self.feat_dim = out.shape[-1]
        return out

    def parse_feature(self, x, is_feature):
        if is_feature:
            z_all = x
        else:
            x = x.reshape((self.n_way * (self.n_support + self.n_query),)
                          + x.shape[2:])
            z_all = feature_forward(self.params, x)
            z_all = z_all.reshape(self.n_way, self.n_support + self.n_query, -1)
        z_support = z_all[:, :self.n_support]
        z_query = z_all[:, self.n_support:]
        return z_support, z_query

    # TODO(synk): set_forward / set_forward_loss are abstract in the PyTorch
    # module; train_loop / test_loop / SGD adaptation / tensorboard are
    # host-side logic, not kernels.


if __name__ == "__main__":
    key = jax.random.PRNGKey(0)
    k_param, k_x = jax.random.split(key)

    params = init_params(k_param, in_ch=4, hidden=(8, 16))
    model = MetaTemplate(params, n_way=2, n_support=3)

    # NCHW input, small shapes: batch=2, channels=4, spatial=16x16.
    x = jax.random.normal(k_x, (2, 4, 16, 16), jnp.float32)

    out = model.forward(x)
    out = jax.block_until_ready(out)
    assert out.shape == (2, 16 * 4 * 4), out.shape

    # parse_feature path (reuses the same fused Pallas kernel, batch=10).
    model.n_query = 2
    x_episode = jax.random.normal(k_x, (2, 5, 4, 16, 16), jnp.float32)
    z_s, z_q = model.parse_feature(x_episode, is_feature=False)
    jax.block_until_ready((z_s, z_q))
    assert z_s.shape == (2, 3, 256) and z_q.shape == (2, 2, 256)

    print("KERNEL_OK")
</pallas_src>

<mosaic_0001>
module attributes {stable_mosaic.version = 11 : i64} {
  func.func @conv4_backbone_kernel(%arg0: i32, %arg1: memref<1x18x18x4xf32, #tpu.memory_space<vmem>>, %arg2: memref<36x8xbf16, #tpu.memory_space<vmem>>, %arg3: memref<1x8xf32, #tpu.memory_space<vmem>>, %arg4: memref<72x16xbf16, #tpu.memory_space<vmem>>, %arg5: memref<1x16xf32, #tpu.memory_space<vmem>>, %arg6: memref<1x4x4x16xf32, #tpu.memory_space<vmem>>, %arg7: memref<1x16x16x8xf32, #tpu.memory_space<vmem>>, %arg8: memref<1x10x10x8xf32, #tpu.memory_space<vmem>>, %arg9: memref<1x8x8x16xf32, #tpu.memory_space<vmem>>) attributes {dimension_semantics = [#tpu.dimension_semantics<parallel>], iteration_bounds = array<i64: 2>, scalar_prefetch = 0 : i64, scratch_operands = 3 : i64, tpu.core_type = #tpu.core_type<tc>, window_params = [{transform_indices = @transform_0, window_bounds = array<i64: 1, 18, 18, 4>}, {pipeline_mode = #tpu.pipeline_mode<synchronous>, transform_indices = @transform_1, window_bounds = array<i64: 36, 8>}, {pipeline_mode = #tpu.pipeline_mode<synchronous>, transform_indices = @transform_2, window_bounds = array<i64: 1, 8>}, {pipeline_mode = #tpu.pipeline_mode<synchronous>, transform_indices = @transform_3, window_bounds = array<i64: 72, 16>}, {pipeline_mode = #tpu.pipeline_mode<synchronous>, transform_indices = @transform_4, window_bounds = array<i64: 1, 16>}, {transform_indices = @transform_5, window_bounds = array<i64: 1, 4, 4, 16>}]} {
    %c0 = arith.constant 0 : index
    %c0_0 = arith.constant 0 : index
    %c0_1 = arith.constant 0 : index
    %c0_2 = arith.constant 0 : index
    %0 = vector.load %arg1[%c0, %c0_0, %c0_1, %c0_2] : memref<1x18x18x4xf32, #tpu.memory_space<vmem>>, vector<1x16x16x4xf32>
    %c0_3 = arith.constant 0 : index
    %c0_4 = arith.constant 0 : index
    %c1 = arith.constant 1 : index
    %c0_5 = arith.constant 0 : index
    %1 = vector.load %arg1[%c0_3, %c0_4, %c1, %c0_5] : memref<1x18x18x4xf32, #tpu.memory_space<vmem>>, vector<1x16x16x4xf32>
    %c0_6 = arith.constant 0 : index
    %c0_7 = arith.constant 0 : index
    %c2 = arith.constant 2 : index
    %c0_8 = arith.constant 0 : index
    %2 = vector.load %arg1[%c0_6, %c0_7, %c2, %c0_8] : memref<1x18x18x4xf32, #tpu.memory_space<vmem>>, vector<1x16x16x4xf32>
    %c0_9 = arith.constant 0 : index
    %c1_10 = arith.constant 1 : index
    %c0_11 = arith.constant 0 : index
    %c0_12 = arith.constant 0 : index
    %3 = vector.load %arg1[%c0_9, %c1_10, %c0_11, %c0_12] : memref<1x18x18x4xf32, #tpu.memory_space<vmem>>, vector<1x16x16x4xf32>
    %c0_13 = arith.constant 0 : index
    %c1_14 = arith.constant 1 : index
    %c1_15 = arith.constant 1 : index
    %c0_16 = arith.constant 0 : index
    %4 = vector.load %arg1[%c0_13, %c1_14, %c1_15, %c0_16] : memref<1x18x18x4xf32, #tpu.memory_space<vmem>>, vector<1x16x16x4xf32>
    %c0_17 = arith.constant 0 : index
    %c1_18 = arith.constant 1 : index
    %c2_19 = arith.constant 2 : index
    %c0_20 = arith.constant 0 : index
    %5 = vector.load %arg1[%c0_17, %c1_18, %c2_19, %c0_20] : memref<1x18x18x4xf32, #tpu.memory_space<vmem>>, vector<1x16x16x4xf32>
    %c0_21 = arith.constant 0 : index
    %c2_22 = arith.constant 2 : index
    %c0_23 = arith.constant 0 : index
    %c0_24 = arith.constant 0 : index
    %6 = vector.load %arg1[%c0_21, %c2_22, %c0_23, %c0_24] : memref<1x18x18x4xf32, #tpu.memory_space<vmem>>, vector<1x16x16x4xf32>
    %c0_25 = arith.constant 0 : index
    %c2_26 = arith.constant 2 : index
    %c1_27 = arith.constant 1 : index
    %c0_28 = arith.constant 0 : index
    %7 = vector.load %arg1[%c0_25, %c2_26, %c1_27, %c0_28] : memref<1x18x18x4xf32, #tpu.memory_space<vmem>>, vector<1x16x16x4xf32>
    %c0_29 = arith.constant 0 : index
    %c2_30 = arith.constant 2 : index
    %c2_31 = arith.constant 2 : index
    %c0_32 = arith.constant 0 : index
    %8 = vector.load %arg1[%c0_29, %c2_30, %c2_31, %c0_32] : memref<1x18x18x4xf32, #tpu.memory_space<vmem>>, vector<1x16x16x4xf32>
    %9 = tpu.concatenate %0, %1, %2, %3, %4, %5, %6, %7, %8 in 3 : vector<1x16x16x4xf32>, vector<1x16x16x4xf32>, vector<1x16x16x4xf32>, vector<1x16x16x4xf32>, vector<1x16x16x4xf32>, vector<1x16x16x4xf32>, vector<1x16x16x4xf32>, vector<1x16x16x4xf32>, vector<1x16x16x4xf32> -> vector<1x16x16x36xf32>
    %10 = arith.truncf %9 : vector<1x16x16x36xf32> to vector<1x16x16x36xbf16>
    %c0_33 = arith.constant 0 : index
    %c0_34 = arith.constant 0 : index
    %11 = vector.load %arg2[%c0_33, %c0_34] : memref<36x8xbf16, #tpu.memory_space<vmem>>, vector<36x8xbf16>
    "tpu.trace_start"() <{level = 10 : i32, message = "nhwk,ko->nhwo"}> : () -> ()
    %cst = arith.constant dense<0.000000e+00> : vector<1x16x16x8xf32>
    %12 = tpu.matmul %10, %11, %cst {dimension_numbers = #tpu.dot_dimension_numbers<[3], [0], [0, 1, 2], [1], [0, 0, 0, 1, 0, 2, 1, 1], [], []>} : vector<1x16x16x36xbf16>, vector<36x8xbf16>, vector<1x16x16x8xf32> -> vector<1x16x16x8xf32>
    "tpu.trace_stop"() : () -> ()
    %c0_35 = arith.constant 0 : index
    %c0_36 = arith.constant 0 : index
    %13 = vector.load %arg3[%c0_35, %c0_36] : memref<1x8xf32, #tpu.memory_space<vmem>>, vector<1x8xf32>
    %14 = vector.shape_cast %13 : vector<1x8xf32> to vector<1x1x1x8xf32>
    %15 = vector.broadcast %14 : vector<1x1x1x8xf32> to vector<1x16x16x8xf32>
    %16 = arith.addf %12, %15 : vector<1x16x16x8xf32>
    %cst_37 = arith.constant 0.000000e+00 : f32
    %17 = vector.broadcast %cst_37 : f32 to vector<1x16x16x8xf32>
    %18 = arith.maximumf %16, %17 : vector<1x16x16x8xf32>
    %c0_38 = arith.constant 0 : index
    %c0_39 = arith.constant 0 : index
    %c0_40 = arith.constant 0 : index
    %c0_41 = arith.constant 0 : index
    %19 = vector.load %arg7[%c0_38, %c0_39, %c0_40, %c0_41] : memref<1x16x16x8xf32, #tpu.memory_space<vmem>>, vector<1x16x16x8xf32>
    tpu.vector_store %arg7[%c0_38, %c0_39, %c0_40, %c0_41], %18 {strides = array<i32>} : memref<1x16x16x8xf32, #tpu.memory_space<vmem>>, vector<1x16x16x8xf32>,
    %c0_42 = arith.constant 0 : index
    %c0_43 = arith.constant 0 : index
    %c0_44 = arith.constant 0 : index
    %c0_45 = arith.constant 0 : index
    %20 = tpu.strided_load %arg7[%c0_42, %c0_43, %c0_44, %c0_45] {strides = array<i32: 1, 2, 2, 1>} : memref<1x16x16x8xf32, #tpu.memory_space<vmem>>, vector<1x8x8x8xf32>
    %c0_46 = arith.constant 0 : index
    %c0_47 = arith.constant 0 : index
    %c1_48 = arith.constant 1 : index
    %c0_49 = arith.constant 0 : index
    %21 = tpu.strided_load %arg7[%c0_46, %c0_47, %c1_48, %c0_49] {strides = array<i32: 1, 2, 2, 1>} : memref<1x16x16x8xf32, #tpu.memory_space<vmem>>, vector<1x8x8x8xf32>
    %c0_50 = arith.constant 0 : index
    %c1_51 = arith.constant 1 : index
    %c0_52 = arith.constant 0 : index
    %c0_53 = arith.constant 0 : index
    %22 = tpu.strided_load %arg7[%c0_50, %c1_51, %c0_52, %c0_53] {strides = array<i32: 1, 2, 2, 1>} : memref<1x16x16x8xf32, #tpu.memory_space<vmem>>, vector<1x8x8x8xf32>
    %c0_54 = arith.constant 0 : index
    %c1_55 = arith.constant 1 : index
    %c1_56 = arith.constant 1 : index
    %c0_57 = arith.constant 0 : index
    %23 = tpu.strided_load %arg7[%c0_54, %c1_55, %c1_56, %c0_57] {strides = array<i32: 1, 2, 2, 1>} : memref<1x16x16x8xf32, #tpu.memory_space<vmem>>, vector<1x8x8x8xf32>
    %24 = arith.maximumf %20, %21 : vector<1x8x8x8xf32>
    %25 = arith.maximumf %22, %23 : vector<1x8x8x8xf32>
    %26 = arith.maximumf %24, %25 : vector<1x8x8x8xf32>
    %cst_58 = arith.constant 0.000000e+00 : f32
    %27 = vector.broadcast %cst_58 : f32 to vector<1x10x10x8xf32>
    %c0_59 = arith.constant 0 : index
    %c0_60 = arith.constant 0 : index
    %c0_61 = arith.constant 0 : index
    %c0_62 = arith.constant 0 : index
    %28 = vector.load %arg8[%c0_59, %c0_60, %c0_61, %c0_62] : memref<1x10x10x8xf32, #tpu.memory_space<vmem>>, vector<1x10x10x8xf32>
    tpu.vector_store %arg8[%c0_59, %c0_60, %c0_61, %c0_62], %27 {strides = array<i32>} : memref<1x10x10x8xf32, #tpu.memory_space<vmem>>, vector<1x10x10x8xf32>,
    %c0_63 = arith.constant 0 : index
    %c1_64 = arith.constant 1 : index
    %c1_65 = arith.constant 1 : index
    %c0_66 = arith.constant 0 : index
    %29 = vector.load %arg8[%c0_63, %c1_64, %c1_65, %c0_66] : memref<1x10x10x8xf32, #tpu.memory_space<vmem>>, vector<1x8x8x8xf32>
    tpu.vector_store %arg8[%c0_63, %c1_64, %c1_65, %c0_66], %26 {strides = array<i32>} : memref<1x10x10x8xf32, #tpu.memory_space<vmem>>, vector<1x8x8x8xf32>,
    %c0_67 = arith.constant 0 : index
    %c0_68 = arith.constant 0 : index
    %c0_69 = arith.constant 0 : index
    %c0_70 = arith.constant 0 : index
    %30 = vector.load %arg8[%c0_67, %c0_68, %c0_69, %c0_70] : memref<1x10x10x8xf32, #tpu.memory_space<vmem>>, vector<1x8x8x8xf32>
    %c0_71 = arith.constant 0 : index
    %c0_72 = arith.constant 0 : index
    %c1_73 = arith.constant 1 : index
    %c0_74 = arith.constant 0 : index
    %31 = vector.load %arg8[%c0_71, %c0_72, %c1_73, %c0_74] : memref<1x10x10x8xf32, #tpu.memory_space<vmem>>, vector<1x8x8x8xf32>
    %c0_75 = arith.constant 0 : index
    %c0_76 = arith.constant 0 : index
    %c2_77 = arith.constant 2 : index
    %c0_78 = arith.constant 0 : index
    %32 = vector.load %arg8[%c0_75, %c0_76, %c2_77, %c0_78] : memref<1x10x10x8xf32, #tpu.memory_space<vmem>>, vector<1x8x8x8xf32>
    %c0_79 = arith.constant 0 : index
    %c1_80 = arith.constant 1 : index
    %c0_81 = arith.constant 0 : index
    %c0_82 = arith.constant 0 : index
    %33 = vector.load %arg8[%c0_79, %c1_80, %c0_81, %c0_82] : memref<1x10x10x8xf32, #tpu.memory_space<vmem>>, vector<1x8x8x8xf32>
    %c0_83 = arith.constant 0 : index
    %c1_84 = arith.constant 1 : index
    %c1_85 = arith.constant 1 : index
    %c0_86 = arith.constant 0 : index
    %34 = vector.load %arg8[%c0_83, %c1_84, %c1_85, %c0_86] : memref<1x10x10x8xf32, #tpu.memory_space<vmem>>, vector<1x8x8x8xf32>
    %c0_87 = arith.constant 0 : index
    %c1_88 = arith.constant 1 : index
    %c2_89 = arith.constant 2 : index
    %c0_90 = arith.constant 0 : index
    %35 = vector.load %arg8[%c0_87, %c1_88, %c2_89, %c0_90] : memref<1x10x10x8xf32, #tpu.memory_space<vmem>>, vector<1x8x8x8xf32>
    %c0_91 = arith.constant 0 : index
    %c2_92 = arith.constant 2 : index
    %c0_93 = arith.constant 0 : index
    %c0_94 = arith.constant 0 : index
    %36 = vector.load %arg8[%c0_91, %c2_92, %c0_93, %c0_94] : memref<1x10x10x8xf32, #tpu.memory_space<vmem>>, vector<1x8x8x8xf32>
    %c0_95 = arith.constant 0 : index
    %c2_96 = arith.constant 2 : index
    %c1_97 = arith.constant 1 : index
    %c0_98 = arith.constant 0 : index
    %37 = vector.load %arg8[%c0_95, %c2_96, %c1_97, %c0_98] : memref<1x10x10x8xf32, #tpu.memory_space<vmem>>, vector<1x8x8x8xf32>
    %c0_99 = arith.constant 0 : index
    %c2_100 = arith.constant 2 : index
    %c2_101 = arith.constant 2 : index
    %c0_102 = arith.constant 0 : index
    %38 = vector.load %arg8[%c0_99, %c2_100, %c2_101, %c0_102] : memref<1x10x10x8xf32, #tpu.memory_space<vmem>>, vector<1x8x8x8xf32>
    %39 = tpu.concatenate %30, %31, %32, %33, %34, %35, %36, %37, %38 in 3 : vector<1x8x8x8xf32>, vector<1x8x8x8xf32>, vector<1x8x8x8xf32>, vector<1x8x8x8xf32>, vector<1x8x8x8xf32>, vector<1x8x8x8xf32>, vector<1x8x8x8xf32>, vector<1x8x8x8xf32>, vector<1x8x8x8xf32> -> vector<1x8x8x72xf32>
    %40 = arith.truncf %39 : vector<1x8x8x72xf32> to vector<1x8x8x72xbf16>
    %c0_103 = arith.constant 0 : index
    %c0_104 = arith.constant 0 : index
    %41 = vector.load %arg4[%c0_103, %c0_104] : memref<72x16xbf16, #tpu.memory_space<vmem>>, vector<72x16xbf16>
    "tpu.trace_start"() <{level = 10 : i32, message = "nhwk,ko->nhwo"}> : () -> ()
    %cst_105 = arith.constant dense<0.000000e+00> : vector<1x8x8x16xf32>
    %42 = tpu.matmul %40, %41, %cst_105 {dimension_numbers = #tpu.dot_dimension_numbers<[3], [0], [0, 1, 2], [1], [0, 0, 0, 1, 0, 2, 1, 1], [], []>} : vector<1x8x8x72xbf16>, vector<72x16xbf16>, vector<1x8x8x16xf32> -> vector<1x8x8x16xf32>
    "tpu.trace_stop"() : () -> ()
    %c0_106 = arith.constant 0 : index
    %c0_107 = arith.constant 0 : index
    %43 = vector.load %arg5[%c0_106, %c0_107] : memref<1x16xf32, #tpu.memory_space<vmem>>, vector<1x16xf32>
    %44 = vector.shape_cast %43 : vector<1x16xf32> to vector<1x1x1x16xf32>
    %45 = vector.broadcast %44 : vector<1x1x1x16xf32> to vector<1x8x8x16xf32>
    %46 = arith.addf %42, %45 : vector<1x8x8x16xf32>
    %cst_108 = arith.constant 0.000000e+00 : f32
    %47 = vector.broadcast %cst_108 : f32 to vector<1x8x8x16xf32>
    %48 = arith.maximumf %46, %47 : vector<1x8x8x16xf32>
    %c0_109 = arith.constant 0 : index
    %c0_110 = arith.constant 0 : index
    %c0_111 = arith.constant 0 : index
    %c0_112 = arith.constant 0 : index
    %49 = vector.load %arg9[%c0_109, %c0_110, %c0_111, %c0_112] : memref<1x8x8x16xf32, #tpu.memory_space<vmem>>, vector<1x8x8x16xf32>
    tpu.vector_store %arg9[%c0_109, %c0_110, %c0_111, %c0_112], %48 {strides = array<i32>} : memref<1x8x8x16xf32, #tpu.memory_space<vmem>>, vector<1x8x8x16xf32>,
    %c0_113 = arith.constant 0 : index
    %c0_114 = arith.constant 0 : index
    %c0_115 = arith.constant 0 : index
    %c0_116 = arith.constant 0 : index
    %50 = tpu.strided_load %arg9[%c0_113, %c0_114, %c0_115, %c0_116] {strides = array<i32: 1, 2, 2, 1>} : memref<1x8x8x16xf32, #tpu.memory_space<vmem>>, vector<1x4x4x16xf32>
    %c0_117 = arith.constant 0 : index
    %c0_118 = arith.constant 0 : index
    %c1_119 = arith.constant 1 : index
    %c0_120 = arith.constant 0 : index
    %51 = tpu.strided_load %arg9[%c0_117, %c0_118, %c1_119, %c0_120] {strides = array<i32: 1, 2, 2, 1>} : memref<1x8x8x16xf32, #tpu.memory_space<vmem>>, vector<1x4x4x16xf32>
    %c0_121 = arith.constant 0 : index
    %c1_122 = arith.constant 1 : index
    %c0_123 = arith.constant 0 : index
    %c0_124 = arith.constant 0 : index
    %52 = tpu.strided_load %arg9[%c0_121, %c1_122, %c0_123, %c0_124] {strides = array<i32: 1, 2, 2, 1>} : memref<1x8x8x16xf32, #tpu.memory_space<vmem>>, vector<1x4x4x16xf32>
    %c0_125 = arith.constant 0 : index
    %c1_126 = arith.constant 1 : index
    %c1_127 = arith.constant 1 : index
    %c0_128 = arith.constant 0 : index
    %53 = tpu.strided_load %arg9[%c0_125, %c1_126, %c1_127, %c0_128] {strides = array<i32: 1, 2, 2, 1>} : memref<1x8x8x16xf32, #tpu.memory_space<vmem>>, vector<1x4x4x16xf32>
    %54 = arith.maximumf %50, %51 : vector<1x4x4x16xf32>
    %55 = arith.maximumf %52, %53 : vector<1x4x4x16xf32>
    %56 = arith.maximumf %54, %55 : vector<1x4x4x16xf32>
    %c0_129 = arith.constant 0 : index
    %c0_130 = arith.constant 0 : index
    %c0_131 = arith.constant 0 : index
    %c0_132 = arith.constant 0 : index
    %57 = vector.load %arg6[%c0_129, %c0_130, %c0_131, %c0_132] : memref<1x4x4x16xf32, #tpu.memory_space<vmem>>, vector<1x4x4x16xf32>
    tpu.vector_store %arg6[%c0_129, %c0_130, %c0_131, %c0_132], %56 {strides = array<i32>} : memref<1x4x4x16xf32, #tpu.memory_space<vmem>>, vector<1x4x4x16xf32>,
    return
  }
  func.func @transform_0(%arg0: i32) -> (i32, i32, i32, i32) {
    %c0_i32 = arith.constant 0 : i32
    %c0_i32_0 = arith.constant 0 : i32
    %c0_i32_1 = arith.constant 0 : i32
    %c0_i32_2 = arith.constant 0 : i32
    return %arg0, %c0_i32, %c0_i32_0, %c0_i32_1 : i32, i32, i32, i32
  }
  func.func @transform_1(%arg0: i32) -> (i32, i32) {
    %c0_i32 = arith.constant 0 : i32
    %c0_i32_0 = arith.constant 0 : i32
    %c0_i32_1 = arith.constant 0 : i32
    return %c0_i32, %c0_i32_0 : i32, i32
  }
  func.func @transform_2(%arg0: i32) -> (i32, i32) {
    %c0_i32 = arith.constant 0 : i32
    %c0_i32_0 = arith.constant 0 : i32
    %c0_i32_1 = arith.constant 0 : i32
    return %c0_i32, %c0_i32_0 : i32, i32
  }
  func.func @transform_3(%arg0: i32) -> (i32, i32) {
    %c0_i32 = arith.constant 0 : i32
    %c0_i32_0 = arith.constant 0 : i32
    %c0_i32_1 = arith.constant 0 : i32
    return %c0_i32, %c0_i32_0 : i32, i32
  }
  func.func @transform_4(%arg0: i32) -> (i32, i32) {
    %c0_i32 = arith.constant 0 : i32
    %c0_i32_0 = arith.constant 0 : i32
    %c0_i32_1 = arith.constant 0 : i32
    return %c0_i32, %c0_i32_0 : i32, i32
  }
  func.func @transform_5(%arg0: i32) -> (i32, i32, i32, i32) {
    %c0_i32 = arith.constant 0 : i32
    %c0_i32_0 = arith.constant 0 : i32
    %c0_i32_1 = arith.constant 0 : i32
    %c0_i32_2 = arith.constant 0 : i32
    return %arg0, %c0_i32, %c0_i32_0, %c0_i32_1 : i32, i32, i32, i32
  }
}

</mosaic_0001>

<bundles_post_ra>
// kernel: feature_forward.1
= control target key start
LH: loop header
LB: loop body
LE: loop exit
PB: predicated region body
PF: predicated region fallthrough
CT: control target
= control target key end

     0   :  { %s4155_s18 = smov 0   ;;  %s5513_s0 = inlined_call_operand.vmem [shape: f32[2,18,18,4], index: 0, kind: input, shape index: {}]   ;;  %s5514_s1 = inlined_call_operand.vmem [shape: bf16[36,8], index: 1, kind: input, shape index: {}]   ;;  %s5515_s2 = inlined_call_operand.vmem [shape: f32[1,8], index: 2, kind: input, shape index: {}]   ;;  %s5516_s3 = inlined_call_operand.vmem [shape: bf16[72,16], index: 3, kind: input, shape index: {}]   ;;  %s5517_s4 = inlined_call_operand.vmem [shape: f32[1,16], index: 4, kind: input, shape index: {}]   ;;  %s5518_s5 = inlined_call_operand.vmem [shape: f32[2,4,4,16], index: 5, kind: output, shape index: {}]  }
   0x1 LB: > { %s2933_s19 = sadd.s32 4294967295, %s4110_s18   ;;  %p2937_p0 = scmp.ge.s32.totalorder %s4110_s18, 1  ;;  %s4110_s18 = sphi %s4155_s18, %s15_s18  }
   0x2   : > { %p187_p1 = scmp.lt.s32.totalorder %s4110_s18, 3 }
   0x4   : > { %p188_p2 = pnand %p2937_p0, %p187_p1 }
   0x5   : > { %p215_p3 = scmp.lt.s32.totalorder (!%p188_p2), %s2933_s19, 1  ;;  %s4112_s24 = smov (!%p188_p2), 4  }
   0x6   : > { %191 = sbr.rel (%p188_p2) target bundleno = 998 (0x3e6), region = 40  ;;  %s4113_s25 = smov (!%p188_p2), 8  }
   0x7   : > { %s4114_s26 = smov (!%p188_p2), 12   ;;  %s4115_s29 = smov (!%p188_p2), 16  }
   0x8   : > { %s4116_s7 = smov (!%p188_p2), 20   ;;  %s4117_s10 = smov (!%p188_p2), 24  }
   0x9   : > { %s4118_s11 = smov (!%p188_p2), 28   ;;  %s4119_s12 = smov (!%p188_p2), 32  }
   0xa   : > { %s4121_s15 = smov (!%p188_p2), 40   ;;  %s4122_s16 = smov (!%p188_p2), 48  }
   0xb   : > { %s5520_s19 = smov (!%p215_p3, %s2933_s19), 1  ;;  %vm1896_vm0 = vcmask 1041408   ;;  %v4089_v38 = vld [vmem:[%s5514_s1 + $0x10] ss:$0 sps:$4 sm:$0x33]   ;;  %v4090_v41 = vld [vmem:[%s5514_s1 + $0x8] sm:$0xff]  }
   0xc   : > { %s3267_s20 = smul.u32 432, %s5520_s19  ;;  %3264 = vmatprep.subr.msk.bf16.mxu0 %vm1896_vm0, %v4089_v38  ;;  %v1898_v40 = vsel %vm1896_vm0, %v4089_v38, 0  ;;  %3265 = vmatprep.subr.msk.bf16.mxu1 %vm1896_vm0, %v4089_v38  ;;  %v4091_v45 = vld [vmem:[%s5514_s1] sm:$0xff]   ;;  %vm1540_vm1 = vcmask 31744   ;;  %vm1573_vm2 = vcmask 64512   ;;  %vm1606_vm3 = vcmask 97280  }
   0xd   : > { %3203 = vmatpush3.bf16.msra.mxu0 %v1898_v40  ;;  %3261 = vmatpush3.bf16.msra.mxu1 %v1898_v40  ;;  %vm1639_vm4 = vcmask 130048   ;;  %vm1672_vm5 = vcmask 162816   ;;  %vm1705_vm6 = vcmask 195584   ;;  %vm1738_vm7 = vcmask 228352   ;;  %s4123_s17 = smov 56   ;;  %s3169_s8 = sshll.u32 %s5520_s19, 4 }
   0xe   : > { %s4169_s23 = scalar_lea.vmem %s5513_s0, %s3267_s20  ;;  %3204 = vmatprep.subr.bf16.mxu0 %v4090_v41  ;;  %3259 = vmatprep.subr.bf16.mxu1 %v4090_v41  ;;  %vm1771_vm8 = vcmask 261120   ;;  %vm1847_vm9 = vcmask 293888   ;;  %vm2213_vm10 = vcmask 58368   ;;  %s4124_s20 = smov 64   ;;  %vm2723_vm11 = vcmask 1043456  }
   0xf   : > { %v262_v0 = vld [vmem:[%s4169_s23 + $0x31] sm:$0xff]  ;;  %v263_v1 = vld [vmem:[%s4169_s23 + $0x39] sm:$0xff]  ;;  %v258_v2 = vld [vmem:[%s4169_s23 + $0x1] sm:$0xff]  ;;  %vm2603_vm12 = vcmask 326656   ;;  %vm2612_vm13 = vcmask 392192   ;;  %vm2621_vm14 = vcmask 457728  }
  0x10   : > { %v4174_v3 = vpack.i.bf16 %v263_v1, %v262_v0  ;;  %v259_v4 = vld [vmem:[%s4169_s23 + $0x9] sm:$0xff]  ;;  %v265_v6 = vld [vmem:[%s4169_s23 + $0x51] sm:$0xff]  ;;  %v260_v8 = vld [vmem:[%s4169_s23 + $0x19] sm:$0xff]  ;;  %vm2630_vm15 = vcmask 523264   ;;  %vm2710_vm0 = vcmask 588800  }
  0x11   : > { %v264_v5 = vld [vmem:[%s4169_s23 + $0x49] sm:$0xff]  ;;  %v3289_v7 = vpack.i.bf16 %v259_v4, %v258_v2  ;;  %v261_v9 = vld [vmem:[%s4169_s23 + $0x21] sm:$0xff]  ;;  %v268_v12 = vld [vmem:[%s4169_s23 + $0x79] sm:$0xff]  ;;  %3205 = vmatpush3.bf16.msra.mxu0 %v4090_v41  ;;  %3262 = vmatpush3.bf16.msra.mxu1 %v4090_v41 }
  0x12   : > { %3300 = vrot.lane.b32.xlu1 %v4174_v3, %s4112_s24  ;;  %v4183_v10 = vpack.i.bf16 %v265_v6, %v264_v5  ;;  %v3294_v11 = vpack.i.bf16 %v261_v9, %v260_v8  ;;  %v269_v13 = vld [vmem:[%s4169_s23 + $0x81] sm:$0xff]  ;;  %v267_v15 = vld [vmem:[%s4169_s23 + $0x69] sm:$0xff]  ;;  %v273_v19 = vld [vmem:[%s4169_s23 + $0xb1] sm:$0xff]  ;;  %3206 = vmatprep.subr.bf16.mxu0 %v4091_v45 }
  0x13   : > { %3290 = vrot.lane.b32.xlu0 %v3289_v7, %s4112_s24  ;;  %v266_v14 = vld [vmem:[%s4169_s23 + $0x61] sm:$0xff]  ;;  %v4192_v16 = vpack.i.bf16 %v269_v13, %v268_v12  ;;  %v272_v18 = vld [vmem:[%s4169_s23 + $0xa9] sm:$0xff]  ;;  %v270_v20 = vld [vmem:[%s4169_s23 + $0x91] sm:$0xff]  ;;  %3260 = vmatprep.subr.bf16.mxu1 %v4091_v45 }
  0x14   : > { %v4195_v17 = vpack.i.bf16 %v267_v15, %v266_v14  ;;  %v271_v21 = vld [vmem:[%s4169_s23 + $0x99] sm:$0xff]  ;;  %v4203_v22 = vpack.i.bf16 %v273_v19, %v272_v18  ;;  %v293_v25 = vld [vmem:[%s4169_s23 + $0x22] sm:$0xff]  ;;  %v291_v27 = vld [vmem:[%s4169_s23 + $0xa] sm:$0xff] }
  0x15   : > { %v4207_v23 = vpack.i.bf16 %v271_v21, %v270_v20  ;;  %v292_v24 = vld [vmem:[%s4169_s23 + $0x1a] sm:$0xff]  ;;  %v290_v26 = vld [vmem:[%s4169_s23 + $0x2] sm:$0xff]  ;;  %v4218_v30 = vld [vmem:[%s4169_s23 + $0x30] sm:$0xff]  ;;  %3207 = vmatpush3.bf16.msra.mxu0 %v4091_v45  ;;  %3263 = vmatpush3.bf16.msra.mxu1 %v4091_v45 }
  0x16   : > { %3305 = vrot.lane.b32.xlu1 %v4183_v10, %s4112_s24  ;;  %v3334_v28 = vpack.i.bf16 %v293_v25, %v292_v24  ;;  %v3329_v29 = vpack.i.bf16 %v291_v27, %v290_v26  ;;  %v4221_v31 = vld [vmem:[%s4169_s23 + $0x38] sm:$0xff]  ;;  %v4227_v33 = vld [vmem:[%s4169_s23 + $0x20] sm:$0xff]  ;;  %v4249_v42 = vld [vmem:[%s4169_s23 + $0x48] sm:$0xff] }
  0x17   : > { %3295 = vrot.lane.b32.xlu0 %v3294_v11, %s4112_s24  ;;  %v4224_v32 = vld [vmem:[%s4169_s23 + $0x18] sm:$0xff]  ;;  %v3344_v34 = vpack.i.bf16 %v4221_v31, %v4218_v30  ;;  %v4252_v43 = vld [vmem:[%s4169_s23 + $0x50] sm:$0xff]  ;;  %v4272_v49 = vld [vmem:[%s4169_s23 + $0x60] sm:$0xff] }
  0x18   : > { %v3339_v35 = vpack.i.bf16 %v4227_v33, %v4224_v32  ;;  %v3007_v36 = vld [vmem:[%s4169_s23 + $0x32] sm:$0xff]  ;;  %v3008_v37 = vld [vmem:[%s4169_s23 + $0x3a] sm:$0xff]  ;;  %v3374_v44 = vpack.i.bf16 %v4252_v43, %v4249_v42  ;;  %v3103_v46 = vld [vmem:[%s4169_s23 + $0x4a] sm:$0xff] }
  0x19   : > { %v3364_v39 = vpack.i.bf16 %v3008_v37, %v3007_v36  ;;  %v3104_v47 = vld [vmem:[%s4169_s23 + $0x52] sm:$0xff]  ;;  %v4275_v50 = vld [vmem:[%s4169_s23 + $0x68] sm:$0xff]  ;;  %v4293_v56 = vld [vmem:[%s4169_s23 + $0x80] sm:$0xff] }
  0x1a   : > { %3315 = vrot.lane.b32.xlu1 %v4192_v16, %s4112_s24  ;;  %v3394_v48 = vpack.i.bf16 %v3104_v47, %v3103_v46  ;;  %v3414_v51 = vpack.i.bf16 %v4275_v50, %v4272_v49  ;;  %v3011_v52 = vld [vmem:[%s4169_s23 + $0x62] sm:$0xff]  ;;  %v3012_v53 = vld [vmem:[%s4169_s23 + $0x6a] sm:$0xff]  ;;  %v4290_v55 = vld [vmem:[%s4169_s23 + $0x78] sm:$0xff] }
  0x1b   : > { %3310 = vrot.lane.b32.xlu0 %v4195_v17, %s4112_s24  ;;  %v3434_v54 = vpack.i.bf16 %v3012_v53, %v3011_v52  ;;  %v3444_v57 = vpack.i.bf16 %v4293_v56, %v4290_v55  ;;  %v3107_v58 = vld [vmem:[%s4169_s23 + $0x7a] sm:$0xff]  ;;  %v3108_v59 = vld [vmem:[%s4169_s23 + $0x82] sm:$0xff]  ;;  %v2951_v61 = vld [vmem:[%s4169_s23 + $0x90] sm:$0xff] }
  0x1c   : > { %v3464_v60 = vpack.i.bf16 %v3108_v59, %v3107_v58  ;;  %v2952_v62 = vld [vmem:[%s4169_s23 + $0x98] sm:$0xff]  ;;  %v280_v8 = vld [vmem:[%s4169_s23 + $0x109] sm:$0xff]  ;;  %v2963_v21 = vld [vmem:[%s4169_s23 + $0x120] sm:$0xff] }
  0x1d   : > { %v3484_v63 = vpack.i.bf16 %v2952_v62, %v2951_v61  ;;  %v278_v0 = vld [vmem:[%s4169_s23 + $0xf1] sm:$0xff]  ;;  %v279_v1 = vld [vmem:[%s4169_s23 + $0xf9] sm:$0xff]  ;;  %v3047_v12 = vld [vmem:[%s4169_s23 + $0xa8] sm:$0xff] }
  0x1e   : > { %3325 = vrot.lane.b32.xlu1 %v4203_v22, %s4112_s24  ;;  %v4319_v2 = vpack.i.bf16 %v279_v1, %v278_v0  ;;  %v3016_v4 = vld [vmem:[%s4169_s23 + $0x9a] sm:$0xff]  ;;  %v310_v6 = vld [vmem:[%s4169_s23 + $0xf2] sm:$0xff]  ;;  %v4339_v15 = vld [vmem:[%s4169_s23 + $0x108] sm:$0xff] }
  0x1f   : > { %3320 = vrot.lane.b32.xlu0 %v4207_v23, %s4112_s24  ;;  %v311_v7 = vld [vmem:[%s4169_s23 + $0xfa] sm:$0xff]  ;;  %v281_v9 = vld [vmem:[%s4169_s23 + $0x111] sm:$0xff]  ;;  %v2964_v24 = vld [vmem:[%s4169_s23 + $0x128] sm:$0xff] }
  0x20   : > { %v3048_v13 = vld [vmem:[%s4169_s23 + $0xb0] sm:$0xff]  ;;  %v3559_v25 = vpack.i.bf16 %v2964_v24, %v2963_v21  ;;  %v3027_v38 = vld [vmem:[%s4169_s23 + $0x122] sm:$0xff]  ;;  %v3059_v52 = vld [vmem:[%s4169_s23 + $0x138] sm:$0xff] }
  0x21   : > { %v3529_v14 = vpack.i.bf16 %v3048_v13, %v3047_v12  ;;  %v313_v18 = vld [vmem:[%s4169_s23 + $0x112] sm:$0xff]  ;;  %v2955_v45 = vld [vmem:[%s4169_s23 + $0xc0] sm:$0xff]  ;;  %v2956_v46 = vld [vmem:[%s4169_s23 + $0xc8] sm:$0xff] }
  0x22   : > { %3335 = vrot.lane.b32.xlu1 %v3334_v28, %s4113_s25  ;;  %v3112_v26 = vld [vmem:[%s4169_s23 + $0xb2] sm:$0xff]  ;;  %v3060_v53 = vld [vmem:[%s4169_s23 + $0x140] sm:$0xff]  ;;  %v227_v24 = vld [vmem:[%s4169_s23 + $0x8] sm:$0xff] }
  0x23   : > { %3330 = vrot.lane.b32.xlu0 %v3329_v29, %s4113_s25  ;;  %v2996_v29 = vld [vmem:[%s4169_s23 + $0x129] sm:$0xff]  ;;  %v2987_v59 = vld [vmem:[%s4169_s23 + $0xc1] sm:$0xff]  ;;  %v3051_v13 = vld [vmem:[%s4169_s23 + $0xd8] sm:$0xff] }
  0x24   : > { %v3092_v0 = vld [vmem:[%s4169_s23 + $0x141] sm:$0xff] }
  0x25   : > { %v3124_v12 = vld [vmem:[%s4169_s23 + $0x142] sm:$0xff] }
  0x26   : > { %3345 = vrot.lane.b32.xlu1 %v3344_v34, %s4114_s26  ;;  %v226_v21 = vld [vmem:[%s4169_s23] sm:$0xff] }
  0x27   : > { %3340 = vrot.lane.b32.xlu0 %v3339_v35, %s4114_s26 }
  0x2a   : > { %3355 = vrot.lane.b32.xlu1 %v4174_v3, %s4115_s29 }
  0x2b   : > { %3350 = vrot.lane.b32.xlu0 %v3294_v11, %s4115_s29  ;;  %v3519_v11 = vpack.i.bf16 %v281_v9, %v280_v8  ;;  %v3123_v9 = vld [vmem:[%s4169_s23 + $0x13a] sm:$0xff] }
  0x2e   : > { %3365 = vrot.lane.b32.xlu1 %v3364_v39, %s4116_s7 }
  0x2f   : > { %3360 = vrot.lane.b32.xlu0 %v3334_v28, %s4116_s7  ;;  %v2995_v28 = vld [vmem:[%s4169_s23 + $0x121] sm:$0xff] }
  0x32   : > { %3375 = vrot.lane.b32.xlu1 %v3374_v44, %s4117_s10 }
  0x33   : > { %3370 = vrot.lane.b32.xlu0 %v3344_v34, %s4117_s10  ;;  %v4363_v34 = vpack.i.bf16 %v2996_v29, %v2995_v28  ;;  %v4446_v29 = vpack.i.bf16 %v3124_v12, %v3123_v9 }
  0x36   : > { %3385 = vrot.lane.b32.xlu1 %v4183_v10, %s4118_s11 }
  0x37   : > { %3380 = vrot.lane.b32.xlu0 %v4174_v3, %s4118_s11  ;;  %v3015_v3 = vld [vmem:[%s4169_s23 + $0x92] sm:$0xff] }
  0x38   : > { %v3509_v5 = vpack.i.bf16 %v3016_v4, %v3015_v3  ;;  %v3019_v4 = vld [vmem:[%s4169_s23 + $0xc2] sm:$0xff] }
  0x3a   : > { %3395 = vrot.lane.b32.xlu1 %v3394_v48, %s4119_s12 }
  0x3b   : > { %3390 = vrot.lane.b32.xlu0 %v3364_v39, %s4119_s12 }
  0x3e   : > { %3405 = vrot.lane.b32.xlu1 %v3394_v48, %s4113_s25 }
  0x3f   : > { %3400 = vrot.lane.b32.xlu0 %v3364_v39, %s4113_s25  ;;  %v3028_v39 = vld [vmem:[%s4169_s23 + $0x12a] sm:$0xff] }
  0x40   : > { %v4380_v41 = vpack.i.bf16 %v3028_v39, %v3027_v38 }
  0x42   : > { %3415 = vrot.lane.b32.xlu1 %v3414_v51, %s4114_s26 }
  0x43   : > { %3410 = vrot.lane.b32.xlu0 %v3374_v44, %s4114_s26 }
  0x46   : > { %3425 = vrot.lane.b32.xlu1 %v4195_v17, %s4115_s29 }
  0x47   : > { %3420 = vrot.lane.b32.xlu0 %v4183_v10, %s4115_s29  ;;  %v3524_v10 = vpack.i.bf16 %v311_v7, %v310_v6 }
  0x4a   : > { %3435 = vrot.lane.b32.xlu1 %v3434_v54, %s4116_s7 }
  0x4b   : > { %3430 = vrot.lane.b32.xlu0 %v3394_v48, %s4116_s7  ;;  %v4391_v48 = vpack.i.bf16 %v2956_v46, %v2955_v45 }
  0x4e   : > { %3445 = vrot.lane.b32.xlu1 %v3444_v57, %s4117_s10 }
  0x4f   : > { %3440 = vrot.lane.b32.xlu0 %v3414_v51, %s4117_s10 }
  0x52   : > { %3455 = vrot.lane.b32.xlu1 %v4192_v16, %s4118_s11 }
  0x53   : > { %3450 = vrot.lane.b32.xlu0 %v4195_v17, %s4118_s11  ;;  %v312_v17 = vld [vmem:[%s4169_s23 + $0x10a] sm:$0xff] }
  0x54   : > { %v3539_v20 = vpack.i.bf16 %v313_v18, %v312_v17 }
  0x56   : > { %3465 = vrot.lane.b32.xlu1 %v3464_v60, %s4119_s12 }
  0x57   : > { %3460 = vrot.lane.b32.xlu0 %v3434_v54, %s4119_s12 }
  0x5a   : > { %3475 = vrot.lane.b32.xlu1 %v3464_v60, %s4113_s25 }
  0x5b   : > { %3470 = vrot.lane.b32.xlu0 %v3434_v54, %s4113_s25 }
  0x5e   : > { %3485 = vrot.lane.b32.xlu1 %v3484_v63, %s4114_s26 }
  0x5f   : > { %3480 = vrot.lane.b32.xlu0 %v3444_v57, %s4114_s26  ;;  %v4403_v57 = vpack.i.bf16 %v3060_v53, %v3059_v52 }
  0x62   : > { %3495 = vrot.lane.b32.xlu1 %v4207_v23, %s4115_s29 }
  0x63   : > { %3490 = vrot.lane.b32.xlu0 %v4192_v16, %s4115_s29  ;;  %v2962_v16 = vld [vmem:[%s4169_s23 + $0x110] sm:$0xff] }
  0x64   : > { %v3544_v19 = vpack.i.bf16 %v2962_v16, %v4339_v15 }
  0x66   : > { %3505 = vrot.lane.b32.xlu1 %v4319_v2, %s4112_s24 }
  0x67   : > { %3500 = vrot.lane.b32.xlu0 %v3464_v60, %s4116_s7  ;;  %v2988_v60 = vld [vmem:[%s4169_s23 + $0xc9] sm:$0xff] }
  0x68   : > { %v4411_v62 = vpack.i.bf16 %v2988_v60, %v2987_v59 }
  0x6a   : > { %3515 = vrot.lane.b32.xlu1 %v3484_v63, %s4117_s10  ;;  %v3091_v63 = vld [vmem:[%s4169_s23 + $0x139] sm:$0xff] }
  0x6b   : > { %3510 = vrot.lane.b32.xlu0 %v3509_v5, %s4116_s7  ;;  %v4420_v3 = vpack.i.bf16 %v3092_v0, %v3091_v63 }
  0x6e   : > { %3525 = vrot.lane.b32.xlu1 %v3524_v10, %s4113_s25 }
  0x6f   : > { %3520 = vrot.lane.b32.xlu0 %v3519_v11, %s4112_s24 }
  0x72   : > { %3535 = vrot.lane.b32.xlu1 %v4207_v23, %s4118_s11  ;;  %v3111_v23 = vld [vmem:[%s4169_s23 + $0xaa] sm:$0xff] }
  0x73   : > { %3530 = vrot.lane.b32.xlu0 %v3529_v14, %s4117_s10  ;;  %v3569_v27 = vpack.i.bf16 %v3112_v26, %v3111_v23 }
  0x76   : > { %3545 = vrot.lane.b32.xlu1 %v3544_v19, %s4114_s26 }
  0x77   : > { %3540 = vrot.lane.b32.xlu0 %v3539_v20, %s4113_s25 }
  0x7a   : > { %3555 = vrot.lane.b32.xlu1 %v3509_v5, %s4119_s12 }
  0x7b   : > { %3550 = vrot.lane.b32.xlu0 %v4203_v22, %s4118_s11 }
  0x7e   : > { %3565 = vrot.lane.b32.xlu1 %v3519_v11, %s4115_s29 }
  0x7f   : > { %3560 = vrot.lane.b32.xlu0 %v3559_v25, %s4114_s26 }
  0x82   : > { %3575 = vrot.lane.b32.xlu1 %v3509_v5, %s4113_s25  ;;  %v3020_v5 = vld [vmem:[%s4169_s23 + $0xca] sm:$0xff] }
  0x83   : > { %3570 = vrot.lane.b32.xlu0 %v3569_v27, %s4119_s12  ;;  %v4430_v8 = vpack.i.bf16 %v3020_v5, %v3019_v4 }
  0x84   : > { %v4365_v35 = vpop.permute.xlu1 %3300 }
  0x85   : > { %v4367_v36 = vpop.permute.xlu0 %3290 }
  0x86   : > { %3585 = vrot.lane.b32.xlu1 %v3539_v20, %s4116_s7  ;;  %v3293_v16 = vunpack.i.h.bf16 %v4367_v36  ;;  %v3292_v17 = vunpack.i.l.bf16 %v4367_v36 }
  0x87   : > { %3580 = vrot.lane.b32.xlu0 %v4363_v34, %s4115_s29 }
  0x88   : > { %v4372_v37 = vpop.permute.xlu1 %3305  ;;  %v1541_v46 = vsel %vm1540_vm1, %v226_v21, %v3292_v17  ;;  %v1542_v52 = vsel %vm1540_vm1, %v227_v24, %v3293_v16 }
  0x89   : > { %v4376_v40 = vpop.permute.xlu0 %3295 }
  0x8a   : > { %3595 = vrot.lane.b32.xlu1 %v3529_v14, %s4114_s26  ;;  %v3298_v10 = vunpack.i.h.bf16 %v4376_v40  ;;  %v3297_v11 = vunpack.i.l.bf16 %v4376_v40  ;;  %v3052_v14 = vld [vmem:[%s4169_s23 + $0xe0] sm:$0xff] }
  0x8b   : > { %3590 = vrot.lane.b32.xlu0 %v3569_v27, %s4113_s25  ;;  %v4448_v38 = vpack.i.bf16 %v3052_v14, %v3051_v13 }
  0x8c   : > { %v4382_v44 = vpop.permute.xlu1 %3315  ;;  %v1543_v36 = vsel %vm1540_vm1, %v4224_v32, %v3297_v11  ;;  %v1544_v39 = vsel %vm1540_vm1, %v4227_v33, %v3298_v10 }
  0x8d   : > { %v4386_v47 = vpop.permute.xlu0 %3310 }
  0x8e   : > { %3605 = vrot.lane.b32.xlu1 %v3559_v25, %s4117_s10 }
  0x8f   : > { %3600 = vrot.lane.b32.xlu0 %v4380_v41, %s4116_s7 }
  0x90   : > { %v4393_v51 = vpop.permute.xlu1 %3325 }
  0x91   : > { %v4397_v54 = vpop.permute.xlu0 %3320 }
  0x92   : > { %3615 = vrot.lane.b32.xlu1 %v4203_v22, %s4115_s29 }
  0x93   : > { %3610 = vrot.lane.b32.xlu0 %v4391_v48, %s4114_s26 }
  0x94   : > { %v3336_v58 = vpop.permute.xlu1 %3335 }
  0x95   : > { %v3331_v61 = vpop.permute.xlu0 %3330  ;;  %v3338_v18 = vunpack.i.h.bf16 %v3336_v58  ;;  %v3337_v19 = vunpack.i.l.bf16 %v3336_v58 }
  0x96   : > { %3625 = vrot.lane.b32.xlu1 %v4363_v34, %s4118_s11  ;;  %v3333_v25 = vunpack.i.h.bf16 %v3331_v61  ;;  %v3332_v23 = vunpack.i.l.bf16 %v3331_v61 }
  0x97   : > { %3620 = vrot.lane.b32.xlu0 %v4403_v57, %s4117_s10  ;;  %v1576_v53 = vsel %vm1573_vm2, %v1543_v36, %v3337_v19  ;;  %v1577_v58 = vsel %vm1573_vm2, %v1544_v39, %v3338_v18 }
  0x98   : > { %v3346_v22 = vpop.permute.xlu1 %3345  ;;  %v1574_v33 = vsel %vm1573_vm2, %v1541_v46, %v3332_v23  ;;  %v1575_v59 = vsel %vm1573_vm2, %v1542_v52, %v3333_v25 }
  0x99   : > { %v4415_v1 = vpop.permute.xlu0 %3340  ;;  %v3347_v28 = vunpack.i.l.bf16 %v3346_v22 }
  0x9a   : > { %3635 = vrot.lane.b32.xlu1 %v3569_v27, %s4116_s7  ;;  %v3348_v27 = vunpack.i.h.bf16 %v3346_v22  ;;  %v3343_v40 = vunpack.i.h.bf16 %v4415_v1  ;;  %v3342_v45 = vunpack.i.l.bf16 %v4415_v1 }
  0x9b   : > { %3630 = vrot.lane.b32.xlu0 %v4411_v62, %s4115_s29  ;;  %v1609_v22 = vsel %vm1606_vm3, %v1576_v53, %v3347_v28 }
  0x9c   : > { %v4424_v6 = vpop.permute.xlu1 %3355  ;;  %v1610_v63 = vsel %vm1606_vm3, %v1577_v58, %v3348_v27  ;;  %v1607_v4 = vsel %vm1606_vm3, %v1574_v33, %v3342_v45  ;;  %v1608_v5 = vsel %vm1606_vm3, %v1575_v59, %v3343_v40 }
  0x9d   : > { %v4426_v7 = vpop.permute.xlu0 %3350  ;;  %v3358_v60 = vunpack.i.h.bf16 %v4424_v6  ;;  %v3357_v61 = vunpack.i.l.bf16 %v4424_v6 }
  0x9e   : > { %3645 = vrot.lane.b32.xlu1 %v4380_v41, %s4119_s12  ;;  %v3353_v0 = vunpack.i.h.bf16 %v4426_v7  ;;  %v3352_v1 = vunpack.i.l.bf16 %v4426_v7 }
  0x9f   : > { %3640 = vrot.lane.b32.xlu0 %v4420_v3, %s4118_s11  ;;  %v1642_v16 = vsel %vm1639_vm4, %v1609_v22, %v3357_v61  ;;  %v1643_v7 = vsel %vm1639_vm4, %v1610_v63, %v3358_v60 }
  0xa0   : > { %v3366_v20 = vpop.permute.xlu1 %3365  ;;  %v1640_v21 = vsel %vm1639_vm4, %v1607_v4, %v3352_v1  ;;  %v1641_v24 = vsel %vm1639_vm4, %v1608_v5, %v3353_v0 }
  0xa1   : > { %v3361_v26 = vpop.permute.xlu0 %3360  ;;  %v3368_v9 = vunpack.i.h.bf16 %v3366_v20  ;;  %v3367_v10 = vunpack.i.l.bf16 %v3366_v20 }
  0xa2   : > { %3655 = vrot.lane.b32.xlu1 %v4430_v8, %s4116_s7  ;;  %v3363_v6 = vunpack.i.h.bf16 %v3361_v26  ;;  %v3362_v11 = vunpack.i.l.bf16 %v3361_v26 }
  0xa3   : > { %3650 = vrot.lane.b32.xlu0 %v4363_v34, %s4112_s24  ;;  %v1676_v23 = vsel %vm1672_vm5, %v1643_v7, %v3368_v9  ;;  %v3083_v9 = vld [vmem:[%s4169_s23 + $0xd9] sm:$0xff] }
  0xa4   : > { %v3376_v32 = vpop.permute.xlu1 %3375  ;;  %v1673_v28 = vsel %vm1672_vm5, %v1640_v21, %v3362_v11  ;;  %v1674_v36 = vsel %vm1672_vm5, %v1641_v24, %v3363_v6 }
  0xa5   : > { %v3371_v34 = vpop.permute.xlu0 %3370  ;;  %v3378_v12 = vunpack.i.h.bf16 %v3376_v32  ;;  %v3377_v13 = vunpack.i.l.bf16 %v3376_v32 }
  0xa6   : > { %3665 = vrot.lane.b32.xlu1 %v4446_v29, %s4119_s12  ;;  %v3373_v17 = vunpack.i.h.bf16 %v3371_v34  ;;  %v3372_v18 = vunpack.i.l.bf16 %v3371_v34 }
  0xa7   : > { %3660 = vrot.lane.b32.xlu0 %v4391_v48, %s4117_s10  ;;  %v1675_v48 = vsel %vm1672_vm5, %v1642_v16, %v3367_v10  ;;  %v1709_v40 = vsel %vm1705_vm6, %v1676_v23, %v3378_v12  ;;  %v3084_v10 = vld [vmem:[%s4169_s23 + $0xe1] sm:$0xff]  ;;  %v3000_v23 = vld [vmem:[%s4169_s23 + $0x159] sm:$0xff] }
  0xa8   : > { %v3386_v14 = vpop.permute.xlu1 %3385  ;;  %v1708_v39 = vsel %vm1705_vm6, %v1675_v48, %v3377_v13  ;;  %v1706_v53 = vsel %vm1705_vm6, %v1673_v28, %v3372_v18  ;;  %v1707_v58 = vsel %vm1705_vm6, %v1674_v36, %v3373_v17  ;;  %v4511_v12 = vpack.i.bf16 %v3084_v10, %v3083_v9  ;;  %v2967_v13 = vld [vmem:[%s4169_s23 + $0x150] sm:$0xff]  ;;  %v3115_v17 = vld [vmem:[%s4169_s23 + $0xda] sm:$0xff]  ;;  %v3116_v18 = vld [vmem:[%s4169_s23 + $0xe2] sm:$0xff] }
  0xa9   : > { %v3381_v19 = vpop.permute.xlu0 %3380  ;;  %v3388_v20 = vunpack.i.h.bf16 %v3386_v14  ;;  %v3387_v25 = vunpack.i.l.bf16 %v3386_v14  ;;  %v2968_v14 = vld [vmem:[%s4169_s23 + $0x158] sm:$0xff]  ;;  %v4526_v24 = vpack.i.bf16 %v3116_v18, %v3115_v17  ;;  %v3307_v48 = vunpack.i.l.bf16 %v4372_v37 }
  0xaa   : > { %3675 = vrot.lane.b32.xlu1 %v4380_v41, %s4113_s25  ;;  %v3383_v26 = vunpack.i.h.bf16 %v3381_v19  ;;  %v3382_v27 = vunpack.i.l.bf16 %v3381_v19  ;;  %v3303_v28 = vunpack.i.h.bf16 %v4365_v35  ;;  %v3302_v36 = vunpack.i.l.bf16 %v4365_v35 }
  0xab   : > { %3670 = vrot.lane.b32.xlu0 %v4420_v3, %s4112_s24  ;;  %v1741_v32 = vsel %vm1738_vm7, %v1708_v39, %v3387_v25  ;;  %v1742_v33 = vsel %vm1738_vm7, %v1709_v40, %v3388_v20  ;;  %v2999_v20 = vld [vmem:[%s4169_s23 + $0x151] sm:$0xff]  ;;  %v3308_v25 = vunpack.i.h.bf16 %v4372_v37 }
  0xac   : > { %v3396_v45 = vpop.permute.xlu1 %3395  ;;  %v1739_v22 = vsel %vm1738_vm7, %v1706_v53, %v3382_v27  ;;  %v1740_v63 = vsel %vm1738_vm7, %v1707_v58, %v3383_v26  ;;  %v3031_v26 = vld [vmem:[%s4169_s23 + $0x152] sm:$0xff]  ;;  %v3032_v27 = vld [vmem:[%s4169_s23 + $0x15a] sm:$0xff]  ;;  %v4540_v37 = vpack.i.bf16 %v3000_v23, %v2999_v20 }
  0xad   : > { %v3398_v46 = vunpack.i.h.bf16 %v3396_v45  ;;  %v3397_v41 = vunpack.i.l.bf16 %v3396_v45  ;;  %v3391_v52 = vpop.permute.xlu0 %3390  ;;  %v1548_v35 = vsel %vm1540_vm1, %v4252_v43, %v3308_v25 }
  0xae   : > { %v3393_v59 = vunpack.i.h.bf16 %v3391_v52  ;;  %v3392_v60 = vunpack.i.l.bf16 %v3391_v52  ;;  %3685 = vrot.lane.b32.xlu1 %v4411_v62, %s4118_s11 }
  0xaf   : > { %v1774_v61 = vsel %vm1771_vm8, %v1741_v32, %v3397_v41  ;;  %v1775_v34 = vsel %vm1771_vm8, %v1742_v33, %v3398_v46  ;;  %3680 = vrot.lane.b32.xlu0 %v4448_v38, %s4117_s10  ;;  %v1547_v32 = vsel %vm1540_vm1, %v4249_v42, %v3307_v48 }
  0xb0   : > { %v3406_v0 = vpop.permute.xlu1 %3405  ;;  %v1772_v1 = vsel %vm1771_vm8, %v1739_v22, %v3392_v60  ;;  %v1773_v4 = vsel %vm1771_vm8, %v1740_v63, %v3393_v59  ;;  %v1805_v5 = vpack.c.bf16 %v1775_v34, %v1774_v61  ;;  %v1545_v60 = vsel %vm1540_vm1, %v4218_v30, %v3302_v36 }
  0xb1   : > { %v3401_v6 = vpop.permute.xlu0 %3400  ;;  %v1804_v11 = vpack.c.bf16 %v1773_v4, %v1772_v1  ;;  %v3408_v39 = vunpack.i.h.bf16 %v3406_v0  ;;  %v3407_v40 = vunpack.i.l.bf16 %v3406_v0  ;;  %v1546_v61 = vsel %vm1540_vm1, %v4221_v31, %v3303_v28 }
  0xb2   : > { %3695 = vrot.lane.b32.xlu1 %v4403_v57, %s4114_s26  ;;  %v4518_v57 = vpack.i.bf16 %v2968_v14, %v2967_v13  ;;  %v3403_v46 = vunpack.i.h.bf16 %v3401_v6  ;;  %v3402_v41 = vunpack.i.l.bf16 %v3401_v6 }
  0xb3   : > { %3690 = vrot.lane.b32.xlu0 %v4446_v29, %s4113_s25  ;;  %3208 = vmatprep.mubr.msk.bf16.mxu0 %vm1847_vm9, %v1804_v11  ;;  %v1580_v34 = vsel %vm1573_vm2, %v1547_v32, %v3407_v40  ;;  %v1581_v22 = vsel %vm1573_vm2, %v1548_v35, %v3408_v39 }
  0xb4   : > { %3209 = vmatmul.mubr.msk.bf16.vlgmr.msra.gmra.mxu0 %vm1847_vm9, %v1805_v5  ;;  %v3416_v16 = vpop.permute.xlu1 %3415  ;;  %v1578_v42 = vsel %vm1573_vm2, %v1545_v60, %v3402_v41  ;;  %v1579_v43 = vsel %vm1573_vm2, %v1546_v61, %v3403_v46 }
  0xb5   : > { %v3411_v7 = vpop.permute.xlu0 %3410  ;;  %v3418_v53 = vunpack.i.h.bf16 %v3416_v16  ;;  %v3417_v58 = vunpack.i.l.bf16 %v3416_v16 }
  0xb6   : > { %3705 = vrot.lane.b32.xlu1 %v4430_v8, %s4119_s12  ;;  %v3413_v33 = vunpack.i.h.bf16 %v3411_v7  ;;  %v3412_v59 = vunpack.i.l.bf16 %v3411_v7 }
  0xb7   : > { %3700 = vrot.lane.b32.xlu0 %v4511_v12, %s4118_s11  ;;  %v1614_v5 = vsel %vm1606_vm3, %v1581_v22, %v3418_v53 }
  0xb8   : > { %v3426_v19 = vpop.permute.xlu1 %3425  ;;  %v1611_v31 = vsel %vm1606_vm3, %v1578_v42, %v3412_v59  ;;  %v1612_v10 = vsel %vm1606_vm3, %v1579_v43, %v3413_v33 }
  0xb9   : > { %v3421_v21 = vpop.permute.xlu0 %3420  ;;  %v3428_v0 = vunpack.i.h.bf16 %v3426_v19  ;;  %v3427_v1 = vunpack.i.l.bf16 %v3426_v19 }
  0xba   : > { %3715 = vrot.lane.b32.xlu1 %v4518_v57, %s4114_s26  ;;  %v3423_v30 = vunpack.i.h.bf16 %v3421_v21  ;;  %v3422_v9 = vunpack.i.l.bf16 %v3421_v21 }
  0xbb   : > { %3710 = vrot.lane.b32.xlu0 %v4411_v62, %s4112_s24  ;;  %v4542_v62 = vpack.i.bf16 %v3032_v27, %v3031_v26  ;;  %v1647_v19 = vsel %vm1639_vm4, %v1614_v5, %v3428_v0 }
  0xbc   : > { %v3436_v45 = vpop.permute.xlu1 %3435  ;;  %v1644_v25 = vsel %vm1639_vm4, %v1611_v31, %v3422_v9  ;;  %v1645_v48 = vsel %vm1639_vm4, %v1612_v10, %v3423_v30  ;;  %v3063_v10 = vld [vmem:[%s4169_s23 + $0x168] sm:$0xff] }
  0xbd   : > { %v3431_v52 = vpop.permute.xlu0 %3430  ;;  %v3438_v6 = vunpack.i.h.bf16 %v3436_v45  ;;  %v3437_v11 = vunpack.i.l.bf16 %v3436_v45 }
  0xbe   : > { %3725 = vrot.lane.b32.xlu1 %v4526_v24, %s4119_s12  ;;  %v3433_v13 = vunpack.i.h.bf16 %v3431_v52  ;;  %v3432_v14 = vunpack.i.l.bf16 %v3431_v52 }
  0xbf   : > { %3720 = vrot.lane.b32.xlu0 %v4420_v3, %s4115_s29  ;;  %v1613_v3 = vsel %vm1606_vm3, %v1580_v34, %v3417_v58  ;;  %v1680_v28 = vsel %vm1672_vm5, %v1647_v19, %v3438_v6  ;;  %v3064_v6 = vld [vmem:[%s4169_s23 + $0x170] sm:$0xff] }
  0xc0   : > { %v3446_v63 = vpop.permute.xlu1 %3445  ;;  %v1646_v18 = vsel %vm1639_vm4, %v1613_v3, %v3427_v1  ;;  %v1677_v40 = vsel %vm1672_vm5, %v1644_v25, %v3432_v14  ;;  %v1678_v45 = vsel %vm1672_vm5, %v1645_v48, %v3433_v13  ;;  %v4600_v3 = vld [vmem:[%s4169_s23 + $0xf8] sm:$0xff] }
  0xc1   : > { %v3441_v4 = vpop.permute.xlu0 %3440  ;;  %v3448_v16 = vunpack.i.h.bf16 %v3446_v63  ;;  %v3447_v7 = vunpack.i.l.bf16 %v3446_v63  ;;  %v1679_v27 = vsel %vm1672_vm5, %v1646_v18, %v3437_v11  ;;  %v3023_v19 = vld [vmem:[%s4169_s23 + $0xf2] sm:$0xff] }
  0xc2   : > { %3735 = vrot.lane.b32.xlu1 %v4430_v8, %s4113_s25  ;;  %v3443_v21 = vunpack.i.h.bf16 %v3441_v4  ;;  %v3442_v8 = vunpack.i.l.bf16 %v3441_v4  ;;  %v4597_v4 = vld [vmem:[%s4169_s23 + $0xf0] sm:$0xff] }
  0xc3   : > { %3730 = vrot.lane.b32.xlu0 %v4511_v12, %s4112_s24  ;;  %v1712_v46 = vsel %vm1705_vm6, %v1679_v27, %v3447_v7  ;;  %v1713_v41 = vsel %vm1705_vm6, %v1680_v28, %v3448_v16  ;;  %v3769_v9 = vpack.i.bf16 %v4600_v3, %v4597_v4  ;;  %v3095_v7 = vld [vmem:[%s4169_s23 + $0x169] sm:$0xff]  ;;  %v3128_v48 = vld [vmem:[%s4169_s23 + $0x172] sm:$0xff]  ;;  %v3313_v27 = vunpack.i.h.bf16 %v4386_v47 }
  0xc4   : > { %v3456_v17 = vpop.permute.xlu1 %3455  ;;  %v1711_v53 = vsel %vm1705_vm6, %v1678_v45, %v3443_v21  ;;  %v3024_v21 = vld [vmem:[%s4169_s23 + $0xfa] sm:$0xff]  ;;  %v3312_v28 = vunpack.i.l.bf16 %v4386_v47 }
  0xc5   : > { %v3451_v20 = vpop.permute.xlu0 %3450  ;;  %v3458_v23 = vunpack.i.h.bf16 %v3456_v17  ;;  %v3457_v26 = vunpack.i.l.bf16 %v3456_v17  ;;  %v3096_v17 = vld [vmem:[%s4169_s23 + $0x171] sm:$0xff]  ;;  %v4643_v25 = vpack.i.bf16 %v3024_v21, %v3023_v19 }
  0xc6   : > { %3745 = vrot.lane.b32.xlu1 %v4446_v29, %s4116_s7  ;;  %v3453_v36 = vunpack.i.h.bf16 %v3451_v20  ;;  %v3452_v39 = vunpack.i.l.bf16 %v3451_v20  ;;  %v1710_v29 = vsel %vm1705_vm6, %v1677_v40, %v3442_v8  ;;  %v4635_v18 = vpack.i.bf16 %v3096_v17, %v3095_v7  ;;  %v3086_v40 = vld [vmem:[%s4169_s23 + $0xf9] sm:$0xff] }
  0xc7   : > { %3740 = vrot.lane.b32.xlu0 %v4540_v37, %s4115_s29  ;;  %v1745_v33 = vsel %vm1738_vm7, %v1712_v46, %v3457_v26  ;;  %v1746_v59 = vsel %vm1738_vm7, %v1713_v41, %v3458_v23 }
  0xc8   : > { %v3466_v52 = vpop.permute.xlu1 %3465  ;;  %v1743_v34 = vsel %vm1738_vm7, %v1710_v29, %v3452_v39  ;;  %v1744_v22 = vsel %vm1738_vm7, %v1711_v53, %v3453_v36  ;;  %v3085_v39 = vld [vmem:[%s4169_s23 + $0xf1] sm:$0xff] }
  0xc9   : > { %v3468_v58 = vunpack.i.h.bf16 %v3466_v52  ;;  %v3467_v32 = vunpack.i.l.bf16 %v3466_v52  ;;  %v3461_v35 = vpop.permute.xlu0 %3460  ;;  %v3844_v47 = vpack.i.bf16 %v3086_v40, %v3085_v39 }
  0xca   : > { %v3463_v60 = vunpack.i.h.bf16 %v3461_v35  ;;  %v3462_v61 = vunpack.i.l.bf16 %v3461_v35  ;;  %3755 = vrot.lane.b32.xlu1 %v4448_v38, %s4114_s26 }
  0xcb   : > { %v1778_v63 = vsel %vm1771_vm8, %v1745_v33, %v3467_v32  ;;  %v1779_v42 = vsel %vm1771_vm8, %v1746_v59, %v3468_v58  ;;  %3750 = vrot.lane.b32.xlu0 %v4526_v24, %s4113_s25  ;;  %v1549_v58 = vsel %vm1540_vm1, %v4272_v49, %v3312_v28  ;;  %v1550_v32 = vsel %vm1540_vm1, %v4275_v50, %v3313_v27 }
  0xcc   : > { %v1776_v43 = vsel %vm1771_vm8, %v1743_v34, %v3462_v61  ;;  %v1777_v0 = vsel %vm1771_vm8, %v1744_v22, %v3463_v60  ;;  %v4594_v1 = vpop.permute.xlu1 %3475  ;;  %v1807_v38 = vpack.c.bf16 %v1779_v42, %v1778_v63  ;;  %v3055_v60 = vld [vmem:[%s4169_s23 + $0x108] sm:$0xff]  ;;  %v3056_v61 = vld [vmem:[%s4169_s23 + $0x110] sm:$0xff] }
  0xcd   : > { %v4602_v5 = vpop.permute.xlu0 %3470  ;;  %v1806_v30 = vpack.c.bf16 %v1777_v0, %v1776_v43  ;;  %v3477_v27 = vunpack.i.l.bf16 %v4594_v1 }
  0xce   : > { %3765 = vrot.lane.b32.xlu1 %v4518_v57, %s4117_s10  ;;  %v4619_v57 = vpack.i.bf16 %v3064_v6, %v3063_v10  ;;  %v3473_v45 = vunpack.i.h.bf16 %v4602_v5  ;;  %v3472_v46 = vunpack.i.l.bf16 %v4602_v5  ;;  %v3318_v10 = vunpack.i.h.bf16 %v4382_v44 }
  0xcf   : > { %3760 = vrot.lane.b32.xlu0 %v4542_v62, %s4116_s7  ;;  %3212 = vmatprep.mubr.msk.bf16.mxu0 %vm1847_vm9, %v1806_v30  ;;  %v3317_v6 = vunpack.i.l.bf16 %v4382_v44 }
  0xd0   : > { %3213 = vmatmul.mubr.msk.bf16.gmra.mxu0 %vm1847_vm9, %v1807_v38  ;;  %v4612_v31 = vpop.permute.xlu1 %3485  ;;  %v1582_v34 = vsel %vm1573_vm2, %v1549_v58, %v3472_v46  ;;  %v1583_v22 = vsel %vm1573_vm2, %v1550_v32, %v3473_v45 }
  0xd1   : > { %v3481_v11 = vpop.permute.xlu0 %3480  ;;  %v3487_v39 = vunpack.i.l.bf16 %v4612_v31 }
  0xd2   : > { %3775 = vrot.lane.b32.xlu1 %v4511_v12, %s4115_s29  ;;  %v3483_v52 = vunpack.i.h.bf16 %v3481_v11  ;;  %v3482_v29 = vunpack.i.l.bf16 %v3481_v11 }
  0xd3   : > { %3770 = vrot.lane.b32.xlu0 %v3769_v9, %s4114_s26 }
  0xd4   : > { %v4621_v13 = vpop.permute.xlu1 %3495  ;;  %v1615_v0 = vsel %vm1606_vm3, %v1582_v34, %v3482_v29  ;;  %v1616_v49 = vsel %vm1606_vm3, %v1583_v22, %v3483_v52 }
  0xd5   : > { %v3491_v14 = vpop.permute.xlu0 %3490  ;;  %v3498_v46 = vunpack.i.h.bf16 %v4621_v13 }
  0xd6   : > { %3785 = vrot.lane.b32.xlu1 %v4540_v37, %s4118_s11  ;;  %v3492_v53 = vunpack.i.l.bf16 %v3491_v14 }
  0xd7   : > { %3780 = vrot.lane.b32.xlu0 %v4619_v57, %s4117_s10 }
  0xd8   : > { %v4627_v16 = vpop.permute.xlu1 %3505  ;;  %v1648_v5 = vsel %vm1639_vm4, %v1615_v0, %v3492_v53  ;;  %v1551_v53 = vsel %vm1540_vm1, %v4290_v55, %v3317_v6 }
  0xd9   : > { %v3501_v12 = vpop.permute.xlu0 %3500 }
  0xda   : > { %3795 = vrot.lane.b32.xlu1 %v4526_v24, %s4116_s7  ;;  %v3127_v24 = vld [vmem:[%s4169_s23 + $0x16a] sm:$0xff]  ;;  %v3503_v35 = vunpack.i.h.bf16 %v3501_v12  ;;  %v3502_v33 = vunpack.i.l.bf16 %v3501_v12 }
  0xdb   : > { %3790 = vrot.lane.b32.xlu0 %v4319_v2, %s4115_s29  ;;  %v4655_v26 = vpack.i.bf16 %v3128_v48, %v3127_v24  ;;  %v3088_v24 = vld [vmem:[%s4169_s23 + $0x111] sm:$0xff]  ;;  %v3478_v48 = vunpack.i.h.bf16 %v4594_v1  ;;  %v3497_v1 = vunpack.i.l.bf16 %v4621_v13  ;;  %v1584_v13 = vsel %vm1573_vm2, %v1551_v53, %v3477_v27 }
  0xdc   : > { %v3516_v8 = vpop.permute.xlu1 %3515  ;;  %v1681_v11 = vsel %vm1672_vm5, %v1648_v5, %v3502_v33  ;;  %v1617_v55 = vsel %vm1606_vm3, %v1584_v13, %v3487_v39  ;;  %v3036_v27 = vld [vmem:[%s4169_s23 + $0x18a] sm:$0xff]  ;;  %v3068_v39 = vld [vmem:[%s4169_s23 + $0x1a0] sm:$0xff]  ;;  %v3508_v13 = vunpack.i.h.bf16 %v4627_v16 }
  0xdd   : > { %v4639_v20 = vpop.permute.xlu0 %3510  ;;  %v3518_v63 = vunpack.i.h.bf16 %v3516_v8  ;;  %v3517_v42 = vunpack.i.l.bf16 %v3516_v8  ;;  %v3087_v8 = vld [vmem:[%s4169_s23 + $0x109] sm:$0xff]  ;;  %v1650_v34 = vsel %vm1639_vm4, %v1617_v55, %v3497_v1  ;;  %v3099_v1 = vld [vmem:[%s4169_s23 + $0x199] sm:$0xff] }
  0xde   : > { %3805 = vrot.lane.b32.xlu1 %v4542_v62, %s4119_s12  ;;  %v3512_v58 = vunpack.i.l.bf16 %v4639_v20 }
  0xdf   : > { %3800 = vrot.lane.b32.xlu0 %v4635_v18, %s4118_s11 }
  0xe0   : > { %v4649_v2 = vpop.permute.xlu1 %3525 }
  0xe1   : > { %v4651_v23 = vpop.permute.xlu0 %3520 }
  0xe2   : > { %3815 = vrot.lane.b32.xlu1 %v4643_v25, %s4116_s7 }
  0xe3   : > { %3810 = vrot.lane.b32.xlu0 %v4540_v37, %s4112_s24  ;;  %v3493_v37 = vunpack.i.h.bf16 %v3491_v14 }
  0xe4   : > { %v3536_v36 = vpop.permute.xlu1 %3535 }
  0xe5   : > { %v4665_v41 = vpop.permute.xlu0 %3530  ;;  %v3538_v38 = vunpack.i.h.bf16 %v3536_v36  ;;  %v3537_v50 = vunpack.i.l.bf16 %v3536_v36  ;;  %v1649_v30 = vsel %vm1639_vm4, %v1616_v49, %v3493_v37  ;;  %v3488_v36 = vunpack.i.h.bf16 %v4612_v31 }
  0xe6   : > { %3825 = vrot.lane.b32.xlu1 %v4655_v26, %s4119_s12  ;;  %v1682_v14 = vsel %vm1672_vm5, %v1649_v30, %v3503_v35  ;;  %v3859_v37 = vpack.i.bf16 %v3088_v24, %v3087_v8  ;;  %v1552_v31 = vsel %vm1540_vm1, %v4293_v56, %v3318_v10  ;;  %v3533_v33 = vunpack.i.h.bf16 %v4665_v41 }
  0xe7   : > { %3820 = vrot.lane.b32.xlu0 %v3769_v9, %s4117_s10  ;;  %v3839_v9 = vpack.i.bf16 %v3056_v61, %v3055_v60  ;;  %v1715_v17 = vsel %vm1705_vm6, %v1682_v14, %v3518_v63  ;;  %v1585_v35 = vsel %vm1573_vm2, %v1552_v31, %v3478_v48  ;;  %v3532_v60 = vunpack.i.l.bf16 %v4665_v41  ;;  %v2972_v63 = vld [vmem:[%s4169_s23 + $0x188] sm:$0xff] }
  0xe8   : > { %v4674_v59 = vpop.permute.xlu1 %3545  ;;  %v1748_v28 = vsel %vm1738_vm7, %v1715_v17, %v3538_v38  ;;  %v1618_v56 = vsel %vm1606_vm3, %v1585_v35, %v3488_v36  ;;  %v3004_v14 = vld [vmem:[%s4169_s23 + $0x189] sm:$0xff]  ;;  %v3507_v35 = vunpack.i.l.bf16 %v4627_v16  ;;  %v3522_v16 = vunpack.i.l.bf16 %v4651_v23 }
  0xe9   : > { %v4680_v43 = vpop.permute.xlu0 %3540  ;;  %v1651_v22 = vsel %vm1639_vm4, %v1618_v56, %v3498_v46  ;;  %v3035_v48 = vld [vmem:[%s4169_s23 + $0x182] sm:$0xff]  ;;  %v3548_v56 = vunpack.i.h.bf16 %v4674_v59 }
  0xea   : > { %3835 = vrot.lane.b32.xlu1 %v4542_v62, %s4113_s25  ;;  %v1714_v62 = vsel %vm1705_vm6, %v1681_v11, %v3517_v42  ;;  %v1683_v42 = vsel %vm1672_vm5, %v1650_v34, %v3512_v58  ;;  %v3003_v11 = vld [vmem:[%s4169_s23 + $0x181] sm:$0xff]  ;;  %v4767_v36 = vpack.i.bf16 %v3036_v27, %v3035_v48  ;;  %v4120_v34 = vmov 0.0  }
  0xeb   : > { %3830 = vrot.lane.b32.xlu0 %v4635_v18, %s4112_s24  ;;  %v1747_v44 = vsel %vm1738_vm7, %v1714_v62, %v3537_v50  ;;  %v1716_v38 = vsel %vm1705_vm6, %v1683_v42, %v3532_v60  ;;  %v3884_v8 = vpack.i.bf16 %v3004_v14, %v3003_v11  ;;  %v3132_v58 = vld [vmem:[%s4169_s23 + $0x1a2] sm:$0xff]  ;;  %v3527_v60 = vunpack.i.l.bf16 %v4649_v2  ;;  %2212 = vst.msk [vmem:[#allocation3] sm:$0xff] %vm1573_vm2, %v4120_v34 }
  0xec   : > { %v3556_v7 = vpop.permute.xlu1 %3555  ;;  %2214 = vst.msk [vmem:[#allocation3 + $0x8] sm:$0x3] %vm2213_vm10, %v4120_v34  ;;  %2216 = vst.msk [vmem:[#allocation3 + $0x18] sm:$0x3] %vm2213_vm10, %v4120_v34 }
  0xed   : > { %v3558_v12 = vunpack.i.h.bf16 %v3556_v7  ;;  %v3557_v19 = vunpack.i.l.bf16 %v3556_v7  ;;  %v3551_v21 = vpop.permute.xlu0 %3550  ;;  %2215 = vst.msk [vmem:[#allocation3 + $0x10] sm:$0xff] %vm1573_vm2, %v4120_v34  ;;  %2217 = vst.msk [vmem:[#allocation3 + $0x20] sm:$0xff] %vm1573_vm2, %v4120_v34 }
  0xee   : > { %3845 = vrot.lane.b32.xlu1 %v3844_v47, %s4118_s11  ;;  %v3513_v47 = vunpack.i.h.bf16 %v4639_v20  ;;  %v3553_v20 = vunpack.i.h.bf16 %v3551_v21  ;;  %v3552_v61 = vunpack.i.l.bf16 %v3551_v21  ;;  %2218 = vst.msk [vmem:[#allocation3 + $0x28] sm:$0x3] %vm2213_vm10, %v4120_v34  ;;  %2220 = vst.msk [vmem:[#allocation3 + $0x38] sm:$0x3] %vm2213_vm10, %v4120_v34 }
  0xef   : > { %v1780_v40 = vsel %vm1771_vm8, %v1747_v44, %v3557_v19  ;;  %v1781_v45 = vsel %vm1771_vm8, %v1748_v28, %v3558_v12  ;;  %3840 = vrot.lane.b32.xlu0 %v3839_v9, %s4117_s10  ;;  %v3119_v12 = vld [vmem:[%s4169_s23 + $0x10a] sm:$0xff]  ;;  %2219 = vst.msk [vmem:[#allocation3 + $0x30] sm:$0xff] %vm1573_vm2, %v4120_v34  ;;  %2221 = vst.msk [vmem:[#allocation3 + $0x40] sm:$0xff] %vm1573_vm2, %v4120_v34 }
  0xf0   : > { %v4710_v52 = vpop.permute.xlu1 %3565  ;;  %v1808_v29 = vpack.c.bf16 %v1781_v45, %v1780_v40  ;;  %v1684_v0 = vsel %vm1672_vm5, %v1651_v22, %v3513_v47  ;;  %v1749_v9 = vsel %vm1738_vm7, %v1716_v38, %v3552_v61  ;;  %v3131_v47 = vld [vmem:[%s4169_s23 + $0x19a] sm:$0xff]  ;;  %2222 = vst.msk [vmem:[#allocation3 + $0x48] sm:$0x3] %vm2213_vm10, %v4120_v34  ;;  %2224 = vst.msk [vmem:[#allocation3 + $0x58] sm:$0x3] %vm2213_vm10, %v4120_v34 }
  0xf1   : > { %v4718_v32 = vpop.permute.xlu0 %3560  ;;  %v1717_v50 = vsel %vm1705_vm6, %v1684_v0, %v3533_v33  ;;  %v3924_v61 = vpack.i.bf16 %v3132_v58, %v3131_v47  ;;  %2223 = vst.msk [vmem:[#allocation3 + $0x50] sm:$0xff] %vm1573_vm2, %v4120_v34  ;;  %2225 = vst.msk [vmem:[#allocation3 + $0x60] sm:$0xff] %vm1573_vm2, %v4120_v34  ;;  %v1561_v22 = vsel %vm1540_vm1, %v4597_v4, %v3507_v35 }
  0xf2   : > { %3855 = vrot.lane.b32.xlu1 %v4619_v57, %s4114_s26  ;;  %3216 = vmatprep.mubr.msk.bf16.mxu0 %vm1847_vm9, %v1808_v29  ;;  %v2971_v57 = vld [vmem:[%s4169_s23 + $0x180] sm:$0xff]  ;;  %v1750_v10 = vsel %vm1738_vm7, %v1717_v50, %v3553_v20  ;;  %v3547_v20 = vunpack.i.l.bf16 %v4674_v59  ;;  %2226 = vst.msk [vmem:[#allocation3 + $0x68] sm:$0x3] %vm2213_vm10, %v4120_v34  ;;  %2228 = vst.msk [vmem:[#allocation3 + $0x78] sm:$0x3] %vm2213_vm10, %v4120_v34  ;;  %v3567_v59 = vunpack.i.l.bf16 %v4710_v52  ;;  %v3563_v48 = vunpack.i.h.bf16 %v4718_v32 }
  0xf3   : > { %3850 = vrot.lane.b32.xlu0 %v4655_v26, %s4113_s25  ;;  %v3869_v6 = vpack.i.bf16 %v2972_v63, %v2971_v57  ;;  %v3100_v29 = vld [vmem:[%s4169_s23 + $0x1a1] sm:$0xff]  ;;  %2227 = vst.msk [vmem:[#allocation3 + $0x70] sm:$0xff] %vm1573_vm2, %v4120_v34  ;;  %2229 = vst.msk [vmem:[#allocation3 + $0x80] sm:$0xff] %vm1573_vm2, %v4120_v34  ;;  %v1562_v57 = vsel %vm1540_vm1, %v4600_v3, %v3508_v13  ;;  %v3562_v27 = vunpack.i.l.bf16 %v4718_v32 }
  0xf4   : > { %v4733_v41 = vpop.permute.xlu1 %3575  ;;  %v3914_v31 = vpack.i.bf16 %v3100_v29, %v3099_v1  ;;  %2230 = vst.msk [vmem:[#allocation3 + $0x88] sm:$0x3] %vm2213_vm10, %v4120_v34  ;;  %2232 = vst.msk [vmem:[#allocation3 + $0x98] sm:$0x3] %vm2213_vm10, %v4120_v34  ;;  %v4097_v1 = vld [vmem:[%s4169_s23 + $0x110] sm:$0xff] }
  0xf5   : > { %v3571_v49 = vpop.permute.xlu0 %3570  ;;  %2231 = vst.msk [vmem:[#allocation3 + $0x90] sm:$0xff] %vm1573_vm2, %v4120_v34 }
  0xf6   : > { %v3573_v5 = vunpack.i.h.bf16 %v3571_v49  ;;  %v3572_v30 = vunpack.i.l.bf16 %v3571_v49  ;;  %3865 = vrot.lane.b32.xlu1 %v4643_v25, %s4119_s12  ;;  %v3120_v25 = vld [vmem:[%s4169_s23 + $0x112] sm:$0xff]  ;;  %v1594_v49 = vsel %vm1573_vm2, %v1561_v22, %v3527_v60 }
  0xf7   : > { %3860 = vrot.lane.b32.xlu0 %v3859_v37, %s4118_s11  ;;  %v3879_v24 = vpack.i.bf16 %v3120_v25, %v3119_v12  ;;  %v1627_v4 = vsel %vm1606_vm3, %v1594_v49, %v3547_v20 }
  0xf8   : > { %v1782_v7 = vsel %vm1771_vm8, %v1749_v9, %v3572_v30  ;;  %v1783_v62 = vsel %vm1771_vm8, %v1750_v10, %v3573_v5  ;;  %v4750_v17 = vpop.permute.xlu1 %3585  ;;  %v3523_v10 = vunpack.i.h.bf16 %v4651_v23  ;;  %v1660_v11 = vsel %vm1639_vm4, %v1627_v4, %v3567_v59 }
  0xf9   : > { %v4754_v19 = vpop.permute.xlu0 %3580  ;;  %v1809_v21 = vpack.c.bf16 %v1783_v62, %v1782_v7  ;;  %v3588_v63 = vunpack.i.h.bf16 %v4750_v17  ;;  %v3587_v42 = vunpack.i.l.bf16 %v4750_v17  ;;  %v3543_v7 = vunpack.i.h.bf16 %v4680_v43 }
  0xfa   : > { %3875 = vrot.lane.b32.xlu1 %v4635_v18, %s4115_s29  ;;  %v3067_v18 = vld [vmem:[%s4169_s23 + $0x198] sm:$0xff]  ;;  %v3542_v62 = vunpack.i.l.bf16 %v4680_v43  ;;  %v1564_v29 = vsel %vm1540_vm1, %v4097_v1, %v3523_v10  ;;  %v3322_v10 = vunpack.i.l.bf16 %v4397_v54  ;;  %v3328_v1 = vunpack.i.h.bf16 %v4393_v51 }
  0xfb   : > { %3870 = vrot.lane.b32.xlu0 %v3869_v6, %s4114_s26  ;;  %3217 = vmatmul.mubr.msk.bf16.gmra.mxu0 %vm1847_vm9, %v1809_v21  ;;  %v3904_v46 = vpack.i.bf16 %v3068_v39, %v3067_v18  ;;  %v1693_v17 = vsel %vm1672_vm5, %v1660_v11, %v3587_v42  ;;  %v3583_v18 = vunpack.i.h.bf16 %v4754_v19  ;;  %v3582_v39 = vunpack.i.l.bf16 %v4754_v19 }
  0xfc   : > { %v4762_v44 = vpop.permute.xlu1 %3595  ;;  %v1597_v35 = vsel %vm1573_vm2, %v1564_v29, %v3543_v7  ;;  %v3578_v11 = vunpack.i.h.bf16 %v4733_v41  ;;  %v4100_v29 = vld [vmem:[%s4169_s23 + $0xa8] sm:$0xff] }
  0xfd   : > { %v4764_v28 = vpop.permute.xlu0 %3590 }
  0xfe   : > { %3885 = vrot.lane.b32.xlu1 %v3884_v8, %s4115_s29 }
  0xff   : > { %3880 = vrot.lane.b32.xlu0 %v3879_v24, %s4119_s12 }
 0x100   : > { %v4772_v40 = vpop.permute.xlu1 %3605 }
 0x101   : > { %v4774_v45 = vpop.permute.xlu0 %3600  ;;  %v3607_v50 = vunpack.i.l.bf16 %v4772_v40 }
 0x102   : > { %3895 = vrot.lane.b32.xlu1 %v4767_v36, %s4116_s7  ;;  %v3602_v47 = vunpack.i.l.bf16 %v4774_v45 }
 0x103   : > { %3890 = vrot.lane.b32.xlu0 %v4655_v26, %s4116_s7  ;;  %v3528_v26 = vunpack.i.h.bf16 %v4649_v2  ;;  %v3568_v2 = vunpack.i.h.bf16 %v4710_v52  ;;  %v3608_v52 = vunpack.i.h.bf16 %v4772_v40  ;;  %v1726_v25 = vsel %vm1705_vm6, %v1693_v17, %v3607_v50 }
 0x104   : > { %v4782_v37 = vpop.permute.xlu1 %3615  ;;  %v3597_v17 = vunpack.i.l.bf16 %v4762_v44 }
 0x105   : > { %v4784_v53 = vpop.permute.xlu0 %3610  ;;  %v1595_v38 = vsel %vm1573_vm2, %v1562_v57, %v3528_v26 }
 0x106   : > { %3905 = vrot.lane.b32.xlu1 %v3904_v46, %s4117_s10  ;;  %v1628_v3 = vsel %vm1606_vm3, %v1595_v38, %v3548_v56  ;;  %v1630_v56 = vsel %vm1606_vm3, %v1597_v35, %v3563_v48 }
 0x107   : > { %3900 = vrot.lane.b32.xlu0 %v3869_v6, %s4117_s10  ;;  %v1563_v6 = vsel %vm1540_vm1, %v4339_v15, %v3522_v16  ;;  %v1661_v14 = vsel %vm1639_vm4, %v1628_v3, %v3568_v2  ;;  %v1663_v34 = vsel %vm1639_vm4, %v1630_v56, %v3583_v18 }
 0x108   : > { %v4792_v33 = vpop.permute.xlu1 %3625  ;;  %v1694_v12 = vsel %vm1672_vm5, %v1661_v14, %v3588_v63  ;;  %v1596_v13 = vsel %vm1573_vm2, %v1563_v6, %v3542_v62  ;;  %v3577_v14 = vunpack.i.l.bf16 %v4733_v41  ;;  %v3598_v62 = vunpack.i.h.bf16 %v4762_v44 }
 0x109   : > { %v4796_v55 = vpop.permute.xlu0 %3620  ;;  %v3628_v30 = vunpack.i.h.bf16 %v4792_v33  ;;  %v3627_v9 = vunpack.i.l.bf16 %v4792_v33  ;;  %v1727_v15 = vsel %vm1705_vm6, %v1694_v12, %v3608_v52  ;;  %v1629_v60 = vsel %vm1606_vm3, %v1596_v13, %v3562_v27 }
 0x10a   : > { %3915 = vrot.lane.b32.xlu1 %v3914_v31, %s4118_s11  ;;  %v3603_v31 = vunpack.i.h.bf16 %v4774_v45  ;;  %v3623_v19 = vunpack.i.h.bf16 %v4796_v55  ;;  %v3622_v33 = vunpack.i.l.bf16 %v4796_v55  ;;  %v1662_v45 = vsel %vm1639_vm4, %v1629_v60, %v3582_v39 }
 0x10b   : > { %3910 = vrot.lane.b32.xlu0 %v3884_v8, %s4118_s11  ;;  %v1760_v43 = vsel %vm1738_vm7, %v1727_v15, %v3628_v30  ;;  %v1695_v16 = vsel %vm1672_vm5, %v1662_v45, %v3602_v47  ;;  %v3327_v12 = vunpack.i.l.bf16 %v4393_v51  ;;  %v4098_v15 = vld [vmem:[%s4169_s23 + $0x90] sm:$0xff]  ;;  %v3592_v13 = vunpack.i.l.bf16 %v4764_v28  ;;  %s224_s11 = scalar_lea.vmem %s5518_s5, %s3169_s8 }
 0x10c   : > { %v4831_v0 = vpop.permute.xlu1 %3635  ;;  %v1696_v2 = vsel %vm1672_vm5, %v1663_v34, %v3603_v31  ;;  %v1728_v55 = vsel %vm1705_vm6, %v1695_v16, %v3622_v33  ;;  %v3613_v45 = vunpack.i.h.bf16 %v4784_v53  ;;  %v3612_v34 = vunpack.i.l.bf16 %v4784_v53 }
 0x10d   : > { %v4837_v5 = vpop.permute.xlu0 %3630  ;;  %v1729_v22 = vsel %vm1705_vm6, %v1696_v2, %v3623_v19  ;;  %v3638_v41 = vunpack.i.h.bf16 %v4831_v0 }
 0x10e   : > { %3925 = vrot.lane.b32.xlu1 %v3924_v61, %s4119_s12  ;;  %v3633_v2 = vunpack.i.h.bf16 %v4837_v5 }
 0x10f   : > { %3920 = vrot.lane.b32.xlu0 %v4767_v36, %s4119_s12  ;;  %v1759_v36 = vsel %vm1738_vm7, %v1726_v25, %v3627_v9  ;;  %v3323_v9 = vunpack.i.h.bf16 %v4397_v54  ;;  %v3617_v25 = vunpack.i.l.bf16 %v4782_v37  ;;  %v1553_v54 = vsel %vm1540_vm1, %v4098_v15, %v3322_v10 }
 0x110   : > { %v3646_v23 = vpop.permute.xlu1 %3645  ;;  %v1586_v44 = vsel %vm1573_vm2, %v1553_v54, %v3577_v14 }
 0x111   : > { %v3648_v21 = vunpack.i.h.bf16 %v3646_v23  ;;  %v3647_v8 = vunpack.i.l.bf16 %v3646_v23  ;;  %v3641_v24 = vpop.permute.xlu0 %3640  ;;  %v3618_v23 = vunpack.i.h.bf16 %v4782_v37  ;;  %v1619_v18 = vsel %vm1606_vm3, %v1586_v44, %v3597_v17 }
 0x112   : > { %v3643_v20 = vunpack.i.h.bf16 %v3641_v24  ;;  %v3642_v61 = vunpack.i.l.bf16 %v3641_v24  ;;  %v3637_v24 = vunpack.i.l.bf16 %v4831_v0  ;;  %v1555_v0 = vsel %vm1540_vm1, %v4100_v29, %v3327_v12 }
 0x113   : > { %v1792_v40 = vsel %vm1771_vm8, %v1759_v36, %v3647_v8  ;;  %v1793_v46 = vsel %vm1771_vm8, %v1760_v43, %v3648_v21  ;;  %v4099_v21 = vld [vmem:[%s4169_s23 + $0x98] sm:$0xff]  ;;  %v1652_v31 = vsel %vm1639_vm4, %v1619_v18, %v3617_v25 }
 0x114   : > { %v4869_v32 = vpop.permute.xlu1 %3655  ;;  %v1814_v58 = vpack.c.bf16 %v1793_v46, %v1792_v40  ;;  %v1761_v49 = vsel %vm1738_vm7, %v1728_v55, %v3642_v61  ;;  %v1762_v38 = vsel %vm1738_vm7, %v1729_v22, %v3643_v20  ;;  %v1554_v8 = vsel %vm1540_vm1, %v4099_v21, %v3323_v9 }
 0x115   : > { %v4875_v26 = vpop.permute.xlu0 %3650  ;;  %v1587_v27 = vsel %vm1573_vm2, %v1554_v8, %v3578_v11  ;;  %v1685_v35 = vsel %vm1672_vm5, %v1652_v31, %v3637_v24 }
 0x116   : > { %3228 = vmatprep.mubr.msk.bf16.mxu1 %vm1847_vm9, %v1814_v58  ;;  %v1620_v39 = vsel %vm1606_vm3, %v1587_v27, %v3598_v62  ;;  %v3593_v58 = vunpack.i.h.bf16 %v4764_v28 }
 0x117   : > { %v1653_v47 = vsel %vm1639_vm4, %v1620_v39, %v3618_v23 }
 0x118   : > { %v3666_v59 = vpop.permute.xlu1 %3665  ;;  %v1686_v19 = vsel %vm1672_vm5, %v1653_v47, %v3638_v41  ;;  %v3653_v47 = vunpack.i.h.bf16 %v4875_v26 }
 0x119   : > { %v3668_v57 = vunpack.i.h.bf16 %v3666_v59  ;;  %v3667_v63 = vunpack.i.l.bf16 %v3666_v59  ;;  %v3661_v42 = vpop.permute.xlu0 %3660  ;;  %v3632_v59 = vunpack.i.l.bf16 %v4837_v5 }
 0x11a   : > { %v3663_v36 = vunpack.i.h.bf16 %v3661_v42  ;;  %v3662_v43 = vunpack.i.l.bf16 %v3661_v42  ;;  %v3658_v42 = vunpack.i.h.bf16 %v4869_v32 }
 0x11b   : > { %v1794_v52 = vsel %vm1771_vm8, %v1761_v49, %v3667_v63  ;;  %v1795_v50 = vsel %vm1771_vm8, %v1762_v38, %v3668_v57  ;;  %v4101_v57 = vld [vmem:[%s4169_s23 + $0xb0] sm:$0xff]  ;;  %v3657_v49 = vunpack.i.l.bf16 %v4869_v32 }
 0x11c   : > { %v1815_v4 = vpack.c.bf16 %v1795_v50, %v1794_v52  ;;  %v4890_v3 = vpop.permute.xlu1 %3675  ;;  %v1718_v60 = vsel %vm1705_vm6, %v1685_v35, %v3662_v43  ;;  %v1719_v51 = vsel %vm1705_vm6, %v1686_v19, %v3663_v36  ;;  %v1556_v63 = vsel %vm1540_vm1, %v4101_v57, %v3328_v1  ;;  %v250_v35 = vld [vmem:[%s4169_s23 + $0x120] sm:$0xff]  ;;  %v251_v19 = vld [vmem:[%s4169_s23 + $0x128] sm:$0xff] }
 0x11d   : > { %v4892_v30 = vpop.permute.xlu0 %3670  ;;  %v1588_v52 = vsel %vm1573_vm2, %v1555_v0, %v3592_v13  ;;  %v1589_v50 = vsel %vm1573_vm2, %v1556_v63, %v3593_v58  ;;  %v3652_v58 = vunpack.i.l.bf16 %v4875_v26  ;;  %v1566_v26 = vsel %vm1540_vm1, %v251_v19, %v3653_v47 }
 0x11e   : > { %3229 = vmatmul.mubr.msk.bf16.vlgmr.msra.gmra.mxu1 %vm1847_vm9, %v1815_v4  ;;  %v1621_v10 = vsel %vm1606_vm3, %v1588_v52, %v3612_v34 }
 0x11f   : > { %v1654_v32 = vsel %vm1639_vm4, %v1621_v10, %v3632_v59 }
 0x120   : > { %v3686_v6 = vpop.permute.xlu1 %3685  ;;  %v1687_v17 = vsel %vm1672_vm5, %v1654_v32, %v3657_v49 }
 0x121   : > { %v4899_v7 = vpop.permute.xlu0 %3680  ;;  %v3688_v40 = vunpack.i.h.bf16 %v3686_v6  ;;  %v3687_v46 = vunpack.i.l.bf16 %v3686_v6  ;;  %v1622_v6 = vsel %vm1606_vm3, %v1589_v50, %v3613_v45  ;;  %v3673_v50 = vunpack.i.h.bf16 %v4892_v30 }
 0x122   : > { %v3683_v5 = vunpack.i.h.bf16 %v4899_v7  ;;  %v3682_v4 = vunpack.i.l.bf16 %v4899_v7  ;;  %v1655_v62 = vsel %vm1639_vm4, %v1622_v6, %v3633_v2 }
 0x123   : > { %v1751_v16 = vsel %vm1738_vm7, %v1718_v60, %v3687_v46  ;;  %v1752_v28 = vsel %vm1738_vm7, %v1719_v51, %v3688_v40  ;;  %v1688_v12 = vsel %vm1672_vm5, %v1655_v62, %v3658_v42  ;;  %v3677_v60 = vunpack.i.l.bf16 %v4890_v3 }
 0x124   : > { %v4912_v48 = vpop.permute.xlu1 %3695  ;;  %v1720_v7 = vsel %vm1705_vm6, %v1687_v17, %v3682_v4  ;;  %v1721_v25 = vsel %vm1705_vm6, %v1688_v12, %v3683_v5  ;;  %v253_v17 = vld [vmem:[%s4169_s23 + $0x140] sm:$0xff] }
 0x125   : > { %v4916_v37 = vpop.permute.xlu0 %3690 }
 0x126   : > { %v3693_v6 = vunpack.i.h.bf16 %v4916_v37 }
 0x128   : > { %v3706_v33 = vpop.permute.xlu1 %3705 }
 0x129   : > { %v3708_v56 = vunpack.i.h.bf16 %v3706_v33  ;;  %v3707_v20 = vunpack.i.l.bf16 %v3706_v33  ;;  %v3701_v61 = vpop.permute.xlu0 %3700  ;;  %v3678_v33 = vunpack.i.h.bf16 %v4890_v3 }
 0x12a   : > { %v3703_v11 = vunpack.i.h.bf16 %v3701_v61  ;;  %v3702_v14 = vunpack.i.l.bf16 %v3701_v61  ;;  %v3672_v61 = vunpack.i.l.bf16 %v4892_v30 }
 0x12b   : > { %v1784_v55 = vsel %vm1771_vm8, %v1751_v16, %v3707_v20  ;;  %v1785_v22 = vsel %vm1771_vm8, %v1752_v28, %v3708_v56  ;;  %v3698_v56 = vunpack.i.h.bf16 %v4912_v48  ;;  %v3697_v20 = vunpack.i.l.bf16 %v4912_v48  ;;  %v252_v28 = vld [vmem:[%s4169_s23 + $0x138] sm:$0xff] }
 0x12c   : > { %v1810_v53 = vpack.c.bf16 %v1785_v22, %v1784_v55  ;;  %v4943_v38 = vpop.permute.xlu1 %3715  ;;  %v1753_v8 = vsel %vm1738_vm7, %v1720_v7, %v3702_v14  ;;  %v1754_v41 = vsel %vm1738_vm7, %v1721_v25, %v3703_v11  ;;  %v1565_v16 = vsel %vm1540_vm1, %v250_v35, %v3652_v58 }
 0x12d   : > { %v4949_v9 = vpop.permute.xlu0 %3710  ;;  %v1598_v3 = vsel %vm1573_vm2, %v1565_v16, %v3677_v60  ;;  %v1599_v22 = vsel %vm1573_vm2, %v1566_v26, %v3678_v33  ;;  %v1567_v5 = vsel %vm1540_vm1, %v252_v28, %v3672_v61  ;;  %v3692_v11 = vunpack.i.l.bf16 %v4916_v37 }
 0x12e   : > { %3220 = vmatprep.mubr.msk.bf16.mxu0 %vm1847_vm9, %v1810_v53  ;;  %v1631_v42 = vsel %vm1606_vm3, %v1598_v3, %v3697_v20  ;;  %v1632_v49 = vsel %vm1606_vm3, %v1599_v22, %v3698_v56 }
 0x12f   : > { %v1600_v58 = vsel %vm1573_vm2, %v1567_v5, %v3692_v11 }
 0x130   : > { %v3726_v23 = vpop.permute.xlu1 %3725 }
 0x131   : > { %v3728_v15 = vunpack.i.h.bf16 %v3726_v23  ;;  %v3727_v54 = vunpack.i.l.bf16 %v3726_v23  ;;  %v3721_v21 = vpop.permute.xlu0 %3720 }
 0x132   : > { %v3723_v45 = vunpack.i.h.bf16 %v3721_v21  ;;  %v3722_v34 = vunpack.i.l.bf16 %v3721_v21 }
 0x133   : > { %v1786_v24 = vsel %vm1771_vm8, %v1753_v8, %v3727_v54  ;;  %v1787_v44 = vsel %vm1771_vm8, %v1754_v41, %v3728_v15  ;;  %v3718_v15 = vunpack.i.h.bf16 %v4943_v38  ;;  %v3717_v54 = vunpack.i.l.bf16 %v4943_v38 }
 0x134   : > { %v1811_v27 = vpack.c.bf16 %v1787_v44, %v1786_v24  ;;  %v4964_v36 = vpop.permute.xlu1 %3735  ;;  %v1664_v4 = vsel %vm1639_vm4, %v1631_v42, %v3722_v34  ;;  %v1665_v10 = vsel %vm1639_vm4, %v1632_v49, %v3723_v45 }
 0x135   : > { %v4966_v43 = vpop.permute.xlu0 %3730  ;;  %v1633_v33 = vsel %vm1606_vm3, %v1600_v58, %v3717_v54  ;;  %v3737_v11 = vunpack.i.l.bf16 %v4964_v36 }
 0x136   : > { %3221 = vmatmul.mubr.msk.bf16.gmra.mxu0 %vm1847_vm9, %v1811_v27  ;;  %v1568_v27 = vsel %vm1540_vm1, %v253_v17, %v3673_v50  ;;  %v3712_v50 = vunpack.i.l.bf16 %v4949_v9  ;;  %v3733_v17 = vunpack.i.h.bf16 %v4966_v43 }
 0x138   : > { %v3746_v18 = vpop.permute.xlu1 %3745 }
 0x139   : > { %v4969_v39 = vpop.permute.xlu0 %3740  ;;  %v3748_v2 = vunpack.i.h.bf16 %v3746_v18  ;;  %v3747_v59 = vunpack.i.l.bf16 %v3746_v18 }
 0x13a   : > { %v3743_v8 = vunpack.i.h.bf16 %v4969_v39  ;;  %v3742_v41 = vunpack.i.l.bf16 %v4969_v39 }
 0x13b   : > { %v1697_v14 = vsel %vm1672_vm5, %v1664_v4, %v3747_v59  ;;  %v1698_v32 = vsel %vm1672_vm5, %v1665_v10, %v3748_v2  ;;  %v242_v4 = vld [vmem:[%s4169_s23 + $0xc0] sm:$0xff]  ;;  %v243_v10 = vld [vmem:[%s4169_s23 + $0xc8] sm:$0xff] }
 0x13c   : > { %v4971_v40 = vpop.permute.xlu1 %3755 }
 0x13d   : > { %v4973_v46 = vpop.permute.xlu0 %3750 }
 0x13e   : > { %v3753_v58 = vunpack.i.h.bf16 %v4973_v46 }
 0x140   : > { %v3766_v1 = vpop.permute.xlu1 %3765 }
 0x141   : > { %v4975_v29 = vpop.permute.xlu0 %3760  ;;  %v3768_v57 = vunpack.i.h.bf16 %v3766_v1  ;;  %v3767_v48 = vunpack.i.l.bf16 %v3766_v1 }
 0x142   : > { %v3763_v18 = vunpack.i.h.bf16 %v4975_v29  ;;  %v3762_v1 = vunpack.i.l.bf16 %v4975_v29  ;;  %v1666_v29 = vsel %vm1639_vm4, %v1633_v33, %v3742_v41 }
 0x143   : > { %v1730_v12 = vsel %vm1705_vm6, %v1697_v14, %v3767_v48  ;;  %v1731_v30 = vsel %vm1705_vm6, %v1698_v32, %v3768_v57  ;;  %v3758_v32 = vunpack.i.h.bf16 %v4971_v40 }
 0x144   : > { %v4977_v0 = vpop.permute.xlu1 %3775  ;;  %v1699_v45 = vsel %vm1672_vm5, %v1666_v29, %v3762_v1 }
 0x145   : > { %v4979_v31 = vpop.permute.xlu0 %3770 }
 0x148   : > { %v3786_v13 = vpop.permute.xlu1 %3785 }
 0x149   : > { %v4987_v51 = vpop.permute.xlu0 %3780  ;;  %v3788_v53 = vunpack.i.h.bf16 %v3786_v13  ;;  %v3787_v52 = vunpack.i.l.bf16 %v3786_v13  ;;  %v1601_v13 = vsel %vm1573_vm2, %v1568_v27, %v3693_v6  ;;  %v3738_v6 = vunpack.i.h.bf16 %v4964_v36  ;;  %v245_v36 = vld [vmem:[%s4169_s23 + $0xe0] sm:$0xff] }
 0x14a   : > { %v3783_v35 = vunpack.i.h.bf16 %v4987_v51  ;;  %v3782_v39 = vunpack.i.l.bf16 %v4987_v51  ;;  %v1634_v60 = vsel %vm1606_vm3, %v1601_v13, %v3718_v15  ;;  %v3752_v13 = vunpack.i.l.bf16 %v4973_v46 }
 0x14b   : > { %v1763_v21 = vsel %vm1738_vm7, %v1730_v12, %v3787_v52  ;;  %v1764_v37 = vsel %vm1738_vm7, %v1731_v30, %v3788_v53  ;;  %v1667_v61 = vsel %vm1639_vm4, %v1634_v60, %v3743_v8  ;;  %v3713_v52 = vunpack.i.h.bf16 %v4949_v9 }
 0x14c   : > { %v4995_v55 = vpop.permute.xlu1 %3795  ;;  %v1700_v34 = vsel %vm1672_vm5, %v1667_v61, %v3763_v18  ;;  %v1732_v51 = vsel %vm1705_vm6, %v1699_v45, %v3782_v39  ;;  %v3732_v12 = vunpack.i.l.bf16 %v4966_v43  ;;  %v3778_v9 = vunpack.i.h.bf16 %v4977_v0 }
 0x14d   : > { %v4999_v63 = vpop.permute.xlu0 %3790  ;;  %v1733_v26 = vsel %vm1705_vm6, %v1700_v34, %v3783_v35  ;;  %v3777_v30 = vunpack.i.l.bf16 %v4977_v0  ;;  %v3798_v15 = vunpack.i.h.bf16 %v4995_v55  ;;  %v3797_v54 = vunpack.i.l.bf16 %v4995_v55 }
 0x14e   : > { %v1560_v55 = vsel %vm1540_vm1, %v245_v36, %v3733_v17  ;;  %v3773_v45 = vunpack.i.h.bf16 %v4979_v31  ;;  %v3772_v34 = vunpack.i.l.bf16 %v4979_v31 }
 0x150   : > { %v3806_v62 = vpop.permute.xlu1 %3805 }
 0x151   : > { %v3808_v23 = vunpack.i.h.bf16 %v3806_v62  ;;  %v3807_v7 = vunpack.i.l.bf16 %v3806_v62  ;;  %v3801_v25 = vpop.permute.xlu0 %3800  ;;  %v3757_v62 = vunpack.i.l.bf16 %v4971_v40 }
 0x152   : > { %v3803_v56 = vunpack.i.h.bf16 %v3801_v25  ;;  %v3802_v20 = vunpack.i.l.bf16 %v3801_v25  ;;  %v244_v25 = vld [vmem:[%s4169_s23 + $0xd8] sm:$0xff] }
 0x153   : > { %v1796_v24 = vsel %vm1771_vm8, %v1763_v21, %v3807_v7  ;;  %v1797_v44 = vsel %vm1771_vm8, %v1764_v37, %v3808_v23  ;;  %v1557_v23 = vsel %vm1540_vm1, %v242_v4, %v3712_v50  ;;  %v1558_v7 = vsel %vm1540_vm1, %v243_v10, %v3713_v52  ;;  %v254_v52 = vld [vmem:[%s4169_s23 + $0x150] sm:$0xff] }
 0x154   : > { %v1816_v47 = vpack.c.bf16 %v1797_v44, %v1796_v24  ;;  %v5025_v38 = vpop.permute.xlu1 %3815  ;;  %v1765_v3 = vsel %vm1738_vm7, %v1732_v51, %v3802_v20  ;;  %v1766_v22 = vsel %vm1738_vm7, %v1733_v26, %v3803_v56  ;;  %v1590_v40 = vsel %vm1573_vm2, %v1557_v23, %v3737_v11 }
 0x155   : > { %v5031_v19 = vpop.permute.xlu0 %3810  ;;  %v1591_v43 = vsel %vm1573_vm2, %v1558_v7, %v3738_v6  ;;  %v1623_v0 = vsel %vm1606_vm3, %v1590_v40, %v3757_v62  ;;  %v1559_v18 = vsel %vm1540_vm1, %v244_v25, %v3732_v12  ;;  %v3793_v51 = vunpack.i.h.bf16 %v4999_v63 }
 0x156   : > { %3232 = vmatprep.mubr.msk.bf16.mxu1 %vm1847_vm9, %v1816_v47  ;;  %v1624_v24 = vsel %vm1606_vm3, %v1591_v43, %v3758_v32  ;;  %v1656_v1 = vsel %vm1639_vm4, %v1623_v0, %v3777_v30  ;;  %v3792_v26 = vunpack.i.l.bf16 %v4999_v63  ;;  %v3813_v12 = vunpack.i.h.bf16 %v5031_v19 }
 0x157   : > { %v1657_v47 = vsel %vm1639_vm4, %v1624_v24, %v3778_v9  ;;  %v1689_v35 = vsel %vm1672_vm5, %v1656_v1, %v3797_v54 }
 0x158   : > { %v3826_v16 = vpop.permute.xlu1 %3825  ;;  %v1690_v39 = vsel %vm1672_vm5, %v1657_v47, %v3798_v15  ;;  %v255_v15 = vld [vmem:[%s4169_s23 + $0x158] sm:$0xff] }
 0x159   : > { %v3828_v28 = vunpack.i.h.bf16 %v3826_v16  ;;  %v3827_v2 = vunpack.i.l.bf16 %v3826_v16  ;;  %v3821_v59 = vpop.permute.xlu0 %3820  ;;  %v1570_v47 = vsel %vm1540_vm1, %v255_v15, %v3813_v12 }
 0x15a   : > { %v3823_v37 = vunpack.i.h.bf16 %v3821_v59  ;;  %v3822_v8 = vunpack.i.l.bf16 %v3821_v59  ;;  %v3818_v59 = vunpack.i.h.bf16 %v5025_v38 }
 0x15b   : > { %v1798_v57 = vsel %vm1771_vm8, %v1765_v3, %v3827_v2  ;;  %v1799_v48 = vsel %vm1771_vm8, %v1766_v22, %v3828_v28  ;;  %v3817_v3 = vunpack.i.l.bf16 %v5025_v38  ;;  %v3812_v22 = vunpack.i.l.bf16 %v5031_v19 }
 0x15c   : > { %v1817_v42 = vpack.c.bf16 %v1799_v48, %v1798_v57  ;;  %v5046_v49 = vpop.permute.xlu1 %3835  ;;  %v1722_v60 = vsel %vm1705_vm6, %v1689_v35, %v3822_v8  ;;  %v1723_v56 = vsel %vm1705_vm6, %v1690_v39, %v3823_v37  ;;  %v1592_v48 = vsel %vm1573_vm2, %v1559_v18, %v3752_v13  ;;  %v5130_v37 = vld [vmem:[%s5515_s2] ss:$0 sm:$0xff] }
 0x15d   : > { %v5048_v53 = vpop.permute.xlu0 %3830  ;;  %v1625_v63 = vsel %vm1606_vm3, %v1592_v48, %v3772_v34  ;;  %v1569_v9 = vsel %vm1540_vm1, %v254_v52, %v3812_v22  ;;  %v3837_v23 = vunpack.i.l.bf16 %v5046_v49 }
 0x15e   : > { %3233 = vmatmul.mubr.msk.bf16.gmra.mxu1 %vm1847_vm9, %v1817_v42  ;;  %v1593_v42 = vsel %vm1573_vm2, %v1560_v55, %v3753_v58  ;;  %v1658_v10 = vsel %vm1639_vm4, %v1625_v63, %v3792_v26  ;;  %v3833_v7 = vunpack.i.h.bf16 %v5048_v53  ;;  %v3832_v25 = vunpack.i.l.bf16 %v5048_v53 }
 0x15f   : > { %v1691_v62 = vsel %vm1672_vm5, %v1658_v10, %v3817_v3  ;;  %v1602_v39 = vsel %vm1573_vm2, %v1569_v9, %v3837_v23 }
 0x160   : > { %v3846_v5 = vpop.permute.xlu1 %3845 }
 0x161   : > { %v5057_v14 = vpop.permute.xlu0 %3840  ;;  %v3848_v44 = vunpack.i.h.bf16 %v3846_v5  ;;  %v3847_v27 = vunpack.i.l.bf16 %v3846_v5  ;;  %v1626_v5 = vsel %vm1606_vm3, %v1593_v42, %v3773_v45 }
 0x162   : > { %v3843_v4 = vunpack.i.h.bf16 %v5057_v14  ;;  %v3842_v38 = vunpack.i.l.bf16 %v5057_v14  ;;  %v1659_v6 = vsel %vm1639_vm4, %v1626_v5, %v3793_v51  ;;  %v3838_v14 = vunpack.i.h.bf16 %v5046_v49 }
 0x163   : > { %v1755_v16 = vsel %vm1738_vm7, %v1722_v60, %v3847_v27  ;;  %v1756_v46 = vsel %vm1738_vm7, %v1723_v56, %v3848_v44  ;;  %v1692_v17 = vsel %vm1672_vm5, %v1659_v6, %v3818_v59 }
 0x164   : > { %v5071_v21 = vpop.permute.xlu1 %3855  ;;  %v1724_v54 = vsel %vm1705_vm6, %v1691_v62, %v3842_v38  ;;  %v1725_v40 = vsel %vm1705_vm6, %v1692_v17, %v3843_v4 }
 0x165   : > { %v5075_v41 = vpop.permute.xlu0 %3850  ;;  %v3858_v8 = vunpack.i.h.bf16 %v5071_v21  ;;  %v3857_v49 = vunpack.i.l.bf16 %v5071_v21 }
 0x166   : > { %v3853_v24 = vunpack.i.h.bf16 %v5075_v41  ;;  %v3852_v44 = vunpack.i.l.bf16 %v5075_v41 }
 0x168   : > { %v3866_v33 = vpop.permute.xlu1 %3865 }
 0x169   : > { %v3868_v20 = vunpack.i.h.bf16 %v3866_v33  ;;  %v3867_v29 = vunpack.i.l.bf16 %v3866_v33  ;;  %v3861_v61 = vpop.permute.xlu0 %3860  ;;  %v1603_v33 = vsel %vm1573_vm2, %v1570_v47, %v3838_v14 }
 0x16a   : > { %v3863_v11 = vunpack.i.h.bf16 %v3861_v61  ;;  %v3862_v32 = vunpack.i.l.bf16 %v3861_v61  ;;  %v4103_v61 = vld [vmem:[%s4169_s23 + $0x170] sm:$0xff]  ;;  %v1636_v51 = vsel %vm1606_vm3, %v1603_v33, %v3858_v8 }
 0x16b   : > { %v1788_v28 = vsel %vm1771_vm8, %v1755_v16, %v3867_v29  ;;  %v1789_v2 = vsel %vm1771_vm8, %v1756_v46, %v3868_v20  ;;  %v4102_v20 = vld [vmem:[%s4169_s23 + $0x168] sm:$0xff]  ;;  %v1572_v45 = vsel %vm1540_vm1, %v4103_v61, %v3833_v7  ;;  %v1635_v46 = vsel %vm1606_vm3, %v1602_v39, %v3857_v49 }
 0x16c   : > { %v1812_v57 = vpack.c.bf16 %v1789_v2, %v1788_v28  ;;  %v5100_v31 = vpop.permute.xlu1 %3875  ;;  %v1757_v0 = vsel %vm1738_vm7, %v1724_v54, %v3862_v32  ;;  %v1758_v53 = vsel %vm1738_vm7, %v1725_v40, %v3863_v11  ;;  %v1571_v29 = vsel %vm1540_vm1, %v4102_v20, %v3832_v25 }
 0x16d   : > { %v5105_v50 = vpop.permute.xlu0 %3870  ;;  %v3877_v21 = vunpack.i.l.bf16 %v5100_v31  ;;  %v3878_v41 = vunpack.i.h.bf16 %v5100_v31  ;;  %v1604_v26 = vsel %vm1573_vm2, %v1571_v29, %v3852_v44  ;;  %v1605_v28 = vsel %vm1573_vm2, %v1572_v45, %v3853_v24 }
 0x16e   : > { %3224 = vmatprep.mubr.msk.bf16.mxu0 %vm1847_vm9, %v1812_v57  ;;  %v3872_v60 = vunpack.i.l.bf16 %v5105_v50  ;;  %v3873_v22 = vunpack.i.h.bf16 %v5105_v50  ;;  %vm2851_vm1 = vcmask 125952  }
 0x16f   : > { %v1668_v3 = vsel %vm1639_vm4, %v1635_v46, %v3877_v21  ;;  %v1669_v42 = vsel %vm1639_vm4, %v1636_v51, %v3878_v41 }
 0x170   : > { %v5118_v30 = vpop.permute.xlu1 %3885  ;;  %v1637_v52 = vsel %vm1606_vm3, %v1604_v26, %v3872_v60  ;;  %v1638_v9 = vsel %vm1606_vm3, %v1605_v28, %v3873_v22 }
 0x171   : > { %v3881_v36 = vpop.permute.xlu0 %3880  ;;  %v3888_v63 = vunpack.i.h.bf16 %v5118_v30  ;;  %v3887_v5 = vunpack.i.l.bf16 %v5118_v30 }
 0x172   : > { %v3883_v43 = vunpack.i.h.bf16 %v3881_v36  ;;  %v3882_v19 = vunpack.i.l.bf16 %v3881_v36 }
 0x173   : > { %v1670_v25 = vsel %vm1639_vm4, %v1637_v52, %v3887_v5  ;;  %v1671_v36 = vsel %vm1639_vm4, %v1638_v9, %v3888_v63  ;;  %v2258_v63 = vld [vmem:[#allocation3 + $0x2] sm:$0xff] }
 0x174   : > { %v1790_v27 = vsel %vm1771_vm8, %v1757_v0, %v3882_v19  ;;  %v1791_v18 = vsel %vm1771_vm8, %v1758_v53, %v3883_v43  ;;  %v3210_v55 = vpop.f32.mrf.mxu0  ;;  %v3896_v1 = vpop.permute.xlu1 %3895 }
 0x175   : > { %v1813_v58 = vpack.c.bf16 %v1791_v18, %v1790_v27  ;;  %v1943_v13 = vadd.f32 %v3210_v55, %v5130_v37  ;;  %v3891_v35 = vpop.permute.xlu0 %3890  ;;  %v3898_v38 = vunpack.i.h.bf16 %v3896_v1  ;;  %v3897_v10 = vunpack.i.l.bf16 %v3896_v1 }
 0x176   : > { %v1934_v56 = vpop.f32.mrf.mxu0  ;;  %v3893_v11 = vunpack.i.h.bf16 %v3891_v35  ;;  %v3892_v32 = vunpack.i.l.bf16 %v3891_v35 }
 0x177   : > { %v2063_v34 = vmax.f32 %v1943_v13, 0.0  ;;  %v1935_v16 = vadd.f32 %v5130_v37, %v1934_v56  ;;  %3225 = vmatmul.mubr.msk.bf16.gmra.mxu0 %vm1847_vm9, %v1813_v58  ;;  %v1703_v40 = vsel %vm1672_vm5, %v1670_v25, %v3897_v10  ;;  %v1704_v43 = vsel %vm1672_vm5, %v1671_v36, %v3898_v38 }
 0x178   : > { %v3211_v2 = vpop.f32.mrf.mxu0  ;;  %v3906_v59 = vpop.permute.xlu1 %3905  ;;  %v1701_v49 = vsel %vm1672_vm5, %v1668_v3, %v3892_v32  ;;  %v1702_v0 = vsel %vm1672_vm5, %v1669_v42, %v3893_v11 }
 0x179   : > { %2095 = vst.msk [vmem:[#allocation2 + $0x10] sm:$0xff] %vm1573_vm2, %v2063_v34  ;;  %v2061_v57 = vmax.f32 %v1935_v16, 0.0  ;;  %v1946_v31 = vadd.f32 %v3211_v2, %v5130_v37  ;;  %v3901_v48 = vpop.permute.xlu0 %3900  ;;  %v3908_v62 = vunpack.i.h.bf16 %v3906_v59  ;;  %v3907_v17 = vunpack.i.l.bf16 %v3906_v59  ;;  %v2250_v59 = vld [vmem:[#allocation3 + $0x1] sm:$0xff] }
 0x17a   : > { %v1937_v4 = vpop.f32.mrf.mxu0  ;;  %v3903_v14 = vunpack.i.h.bf16 %v3901_v48  ;;  %v3902_v23 = vunpack.i.l.bf16 %v3901_v48 }
 0x17b   : > { %2093 = vst.msk [vmem:[#allocation2] sm:$0xff] %vm1573_vm2, %v2061_v57  ;;  %v2064_v50 = vmax.f32 %v1946_v31, 0.0  ;;  %v1938_v6 = vadd.f32 %v5130_v37, %v1937_v4  ;;  %v1736_v53 = vsel %vm1705_vm6, %v1703_v40, %v3907_v17  ;;  %v1737_v24 = vsel %vm1705_vm6, %v1704_v43, %v3908_v62 }
 0x17c   : > { %v3916_v12 = vpop.permute.xlu1 %3915  ;;  %v1734_v27 = vsel %vm1705_vm6, %v1701_v49, %v3902_v23  ;;  %v1735_v18 = vsel %vm1705_vm6, %v1702_v0, %v3903_v14 }
 0x17d   : > { %2096 = vst.msk [vmem:[#allocation2 + $0x18] sm:$0xff] %vm1573_vm2, %v2064_v50  ;;  %v2062_v30 = vmax.f32 %v1938_v6, 0.0  ;;  %v3911_v7 = vpop.permute.xlu0 %3910  ;;  %v3918_v15 = vunpack.i.h.bf16 %v3916_v12  ;;  %v3917_v54 = vunpack.i.l.bf16 %v3916_v12 }
 0x17e   : > { %v3913_v19 = vunpack.i.h.bf16 %v3911_v7  ;;  %v3912_v8 = vunpack.i.l.bf16 %v3911_v7 }
 0x17f   : > { %2094 = vst.msk [vmem:[#allocation2 + $0x8] sm:$0xff] %vm1573_vm2, %v2062_v30  ;;  %v1769_v21 = vsel %vm1738_vm7, %v1736_v53, %v3917_v54  ;;  %v1770_v58 = vsel %vm1738_vm7, %v1737_v24, %v3918_v15 }
 0x180   : > { %v3926_v44 = vpop.permute.xlu1 %3925  ;;  %v1767_v39 = vsel %vm1738_vm7, %v1734_v27, %v3912_v8  ;;  %v1768_v33 = vsel %vm1738_vm7, %v1735_v18, %v3913_v19 }
 0x181   : > { %v3928_v55 = vunpack.i.h.bf16 %v3926_v44  ;;  %v3927_v1 = vunpack.i.l.bf16 %v3926_v44  ;;  %v3921_v47 = vpop.permute.xlu0 %3920 }
 0x182   : > { %v3923_v13 = vunpack.i.h.bf16 %v3921_v47  ;;  %v3922_v35 = vunpack.i.l.bf16 %v3921_v47 }
 0x183   : > { %v1802_v41 = vsel %vm1771_vm8, %v1769_v21, %v3927_v1  ;;  %v1803_v60 = vsel %vm1771_vm8, %v1770_v58, %v3928_v55 }
 0x184   : > { %v2157_v56 = vld [vmem:[#allocation2 + $0x10] ss:$2 sm:$0xff]  ;;  %v2173_v20 = vld [vmem:[#allocation2 + $0x11] ss:$2 sm:$0xff]  ;;  %v1819_v29 = vpack.c.bf16 %v1803_v60, %v1802_v41  ;;  %v1800_v61 = vsel %vm1771_vm8, %v1767_v39, %v3922_v35  ;;  %v1801_v45 = vsel %vm1771_vm8, %v1768_v33, %v3923_v13 }
 0x185   : > { %v1818_v34 = vpack.c.bf16 %v1801_v45, %v1800_v61  ;;  %v2196_v51 = vmax.f32 %v2157_v56, %v2173_v20 }
 0x186   : > { %v2125_v16 = vld [vmem:[#allocation2] ss:$2 sm:$0xff]  ;;  %v2141_v46 = vld [vmem:[#allocation2 + $0x1] ss:$2 sm:$0xff] }
 0x187   : > { %v2188_v26 = vmax.f32 %v2125_v16, %v2141_v46  ;;  %3236 = vmatprep.mubr.msk.bf16.mxu1 %vm1847_vm9, %v1818_v34 }
 0x188   : > { %3237 = vmatmul.mubr.msk.bf16.gmra.mxu1 %vm1847_vm9, %v1819_v29 }
 0x189   : > { %v2204_v28 = vmax.f32 %v2188_v26, %v2196_v51 }
 0x18b   : > { %2234 = vst.msk [vmem:[#allocation3 + $0x11] sm:$0xff] %vm1573_vm2, %v2204_v28 }
 0x190   : > { %v3214_v2 = vpop.f32.mrf.mxu0 }
 0x191   : > { %v1959_v3 = vadd.f32 %v3214_v2, %v5130_v37 }
 0x192   : > { %v1950_v22 = vpop.f32.mrf.mxu0  ;;  %v2251_v57 = vld [vmem:[#allocation3 + $0x11] sm:$0xff] }
 0x193   : > { %v2067_v31 = vmax.f32 %v1959_v3, 0.0  ;;  %v1951_v48 = vadd.f32 %v5130_v37, %v1950_v22  ;;  %v3929_v42 = vpack.i.bf16 %v2251_v57, %v2250_v59  ;;  %v2259_v5 = vld [vmem:[#allocation3 + $0x12] sm:$0xff] }
 0x194   : > { %v3215_v52 = vpop.f32.mrf.mxu0  ;;  %v3934_v11 = vpack.i.bf16 %v2259_v5, %v2258_v63  ;;  %v5202_v7 = vld [vmem:[#allocation3 + $0x10] sm:$0xff] }
 0x195   : > { %2099 = vst.msk [vmem:[#allocation2 + $0x30] sm:$0xff] %vm1573_vm2, %v2067_v31  ;;  %v2065_v4 = vmax.f32 %v1951_v48, 0.0  ;;  %v1962_v38 = vadd.f32 %v3215_v52, %v5130_v37  ;;  %3930 = vrot.lane.b32.xlu0 %v3929_v42, %s4113_s25 }
 0x196   : > { %v1953_v10 = vpop.f32.mrf.mxu0 }
 0x197   : > { %2097 = vst.msk [vmem:[#allocation2 + $0x20] sm:$0xff] %vm1573_vm2, %v2065_v4  ;;  %v2068_v50 = vmax.f32 %v1962_v38, 0.0  ;;  %v1954_v6 = vadd.f32 %v5130_v37, %v1953_v10 }
 0x199   : > { %2100 = vst.msk [vmem:[#allocation2 + $0x38] sm:$0xff] %vm1573_vm2, %v2068_v50  ;;  %v2066_v32 = vmax.f32 %v1954_v6, 0.0  ;;  %3935 = vrot.lane.b32.xlu0 %v3934_v11, %s4115_s29 }
 0x19b   : > { %2098 = vst.msk [vmem:[#allocation2 + $0x28] sm:$0xff] %vm1573_vm2, %v2066_v32 }
 0x1a0   : > { %v2159_v62 = vld [vmem:[#allocation2 + $0x30] ss:$2 sm:$0xff]  ;;  %v2175_v17 = vld [vmem:[#allocation2 + $0x31] ss:$2 sm:$0xff] }
 0x1a1   : > { %v2197_v14 = vmax.f32 %v2159_v62, %v2175_v17 }
 0x1a2   : > { %v2127_v12 = vld [vmem:[#allocation2 + $0x20] ss:$2 sm:$0xff]  ;;  %v2143_v9 = vld [vmem:[#allocation2 + $0x21] ss:$2 sm:$0xff] }
 0x1a3   : > { %v2189_v23 = vmax.f32 %v2127_v12, %v2143_v9 }
 0x1a5   : > { %v2205_v30 = vmax.f32 %v2189_v23, %v2197_v14 }
 0x1a7   : > { %2235 = vst.msk [vmem:[#allocation3 + $0x21] sm:$0xff] %vm1573_vm2, %v2205_v30 }
 0x1ae   : > { %v5204_v25 = vld [vmem:[#allocation3 + $0x20] sm:$0xff] }
 0x1af   : > { %v3939_v36 = vpack.i.bf16 %v5204_v25, %v5202_v7  ;;  %v5208_v15 = vld [vmem:[#allocation3 + $0x21] sm:$0xff] }
 0x1b0   : > { %v3944_v54 = vpack.i.bf16 %v5208_v15, %v2251_v57  ;;  %v5212_v40 = vld [vmem:[#allocation3 + $0x22] sm:$0xff] }
 0x1b1   : > { %3940 = vrot.lane.b32.xlu0 %v3939_v36, %s4117_s10  ;;  %v3949_v43 = vpack.i.bf16 %v5212_v40, %v2259_v5 }
 0x1b5   : > { %3945 = vrot.lane.b32.xlu0 %v3944_v54, %s4119_s12 }
 0x1b9   : > { %3950 = vrot.lane.b32.xlu0 %v3949_v43, %s4121_s15 }
 0x1bb   : > { %v3218_v19 = vpop.f32.mrf.mxu0 }
 0x1bc   : > { %v1975_v8 = vadd.f32 %v3218_v19, %v5130_v37 }
 0x1bd   : > { %v1966_v49 = vpop.f32.mrf.mxu0 }
 0x1be   : > { %v2071_v0 = vmax.f32 %v1975_v8, 0.0  ;;  %v1967_v53 = vadd.f32 %v5130_v37, %v1966_v49 }
 0x1bf   : > { %v3219_v24 = vpop.f32.mrf.mxu0 }
 0x1c0   : > { %2103 = vst.msk [vmem:[#allocation2 + $0x50] sm:$0xff] %vm1573_vm2, %v2071_v0  ;;  %v2069_v44 = vmax.f32 %v1967_v53, 0.0  ;;  %v1978_v27 = vadd.f32 %v3219_v24, %v5130_v37 }
 0x1c1   : > { %v1969_v18 = vpop.f32.mrf.mxu0 }
 0x1c2   : > { %2101 = vst.msk [vmem:[#allocation2 + $0x40] sm:$0xff] %vm1573_vm2, %v2069_v44  ;;  %v2072_v55 = vmax.f32 %v1978_v27, 0.0  ;;  %v1970_v1 = vadd.f32 %v5130_v37, %v1969_v18 }
 0x1c4   : > { %2104 = vst.msk [vmem:[#allocation2 + $0x58] sm:$0xff] %vm1573_vm2, %v2072_v55  ;;  %v2070_v47 = vmax.f32 %v1970_v1, 0.0 }
 0x1c6   : > { %2102 = vst.msk [vmem:[#allocation2 + $0x48] sm:$0xff] %vm1573_vm2, %v2070_v47 }
 0x1cb   : > { %v2161_v21 = vld [vmem:[#allocation2 + $0x50] ss:$2 sm:$0xff]  ;;  %v2177_v58 = vld [vmem:[#allocation2 + $0x51] ss:$2 sm:$0xff] }
 0x1cc   : > { %v2198_v39 = vmax.f32 %v2161_v21, %v2177_v58 }
 0x1cd   : > { %v2129_v13 = vld [vmem:[#allocation2 + $0x40] ss:$2 sm:$0xff]  ;;  %v2145_v35 = vld [vmem:[#allocation2 + $0x41] ss:$2 sm:$0xff] }
 0x1ce   : > { %v2190_v33 = vmax.f32 %v2129_v13, %v2145_v35 }
 0x1d0   : > { %v2206_v41 = vmax.f32 %v2190_v33, %v2198_v39 }
 0x1d2   : > { %2236 = vst.msk [vmem:[#allocation3 + $0x31] sm:$0xff] %vm1573_vm2, %v2206_v41 }
 0x1de   : > { %v3230_v60 = vpop.f32.mrf.mxu1 }
 0x1df   : > { %v2023_v56 = vadd.f32 %v3230_v60, %v5130_v37 }
 0x1e0   : > { %v2014_v20 = vpop.f32.mrf.mxu1 }
 0x1e1   : > { %v2083_v29 = vmax.f32 %v2023_v56, 0.0  ;;  %v2015_v61 = vadd.f32 %v5130_v37, %v2014_v20 }
 0x1e2   : > { %v3231_v45 = vpop.f32.mrf.mxu1 }
 0x1e3   : > { %2115 = vst.msk [vmem:[#allocation2 + $0xb0] sm:$0xff] %vm1573_vm2, %v2083_v29  ;;  %v2081_v34 = vmax.f32 %v2015_v61, 0.0  ;;  %v2026_v16 = vadd.f32 %v3231_v45, %v5130_v37 }
 0x1e4   : > { %v2017_v46 = vpop.f32.mrf.mxu1 }
 0x1e5   : > { %2113 = vst.msk [vmem:[#allocation2 + $0xa0] sm:$0xff] %vm1573_vm2, %v2081_v34  ;;  %v2084_v51 = vmax.f32 %v2026_v16, 0.0  ;;  %v2018_v26 = vadd.f32 %v5130_v37, %v2017_v46 }
 0x1e7   : > { %2116 = vst.msk [vmem:[#allocation2 + $0xb8] sm:$0xff] %vm1573_vm2, %v2084_v51  ;;  %v2082_v28 = vmax.f32 %v2018_v26, 0.0 }
 0x1e9   : > { %2114 = vst.msk [vmem:[#allocation2 + $0xa8] sm:$0xff] %vm1573_vm2, %v2082_v28 }
 0x1ee   : > { %v2167_v2 = vld [vmem:[#allocation2 + $0xb0] ss:$2 sm:$0xff]  ;;  %v2183_v59 = vld [vmem:[#allocation2 + $0xb1] ss:$2 sm:$0xff] }
 0x1ef   : > { %v2201_v57 = vmax.f32 %v2167_v2, %v2183_v59 }
 0x1f0   : > { %v2135_v3 = vld [vmem:[#allocation2 + $0xa0] ss:$2 sm:$0xff]  ;;  %v2151_v22 = vld [vmem:[#allocation2 + $0xa1] ss:$2 sm:$0xff] }
 0x1f1   : > { %v2193_v31 = vmax.f32 %v2135_v3, %v2151_v22 }
 0x1f3   : > { %v2209_v48 = vmax.f32 %v2193_v31, %v2201_v57 }
 0x1f5   : > { %2239 = vst.msk [vmem:[#allocation3 + $0x61] sm:$0xff] %vm1573_vm2, %v2209_v48 }
 0x1f6   : > { %v3222_v42 = vpop.f32.mrf.mxu0 }
 0x1f7   : > { %v1991_v52 = vadd.f32 %v3222_v42, %v5130_v37  ;;  %v5283_v42 = vld [vmem:[#allocation3 + $0x31] sm:$0xff] }
 0x1f8   : > { %v1982_v63 = vpop.f32.mrf.mxu0 }
 0x1f9   : > { %v2075_v5 = vmax.f32 %v1991_v52, 0.0  ;;  %v1983_v4 = vadd.f32 %v5130_v37, %v1982_v63  ;;  %v5285_v52 = vld [vmem:[#allocation3 + $0x30] sm:$0xff]  ;;  %v3974_v63 = vpack.i.bf16 %v5283_v42, %v5208_v15 }
 0x1fa   : > { %v3223_v38 = vpop.f32.mrf.mxu0 }
 0x1fb   : > { %2107 = vst.msk [vmem:[#allocation2 + $0x70] sm:$0xff] %vm1573_vm2, %v2075_v5  ;;  %v2073_v10 = vmax.f32 %v1983_v4, 0.0  ;;  %v1994_v50 = vadd.f32 %v3223_v38, %v5130_v37  ;;  %v3984_v5 = vpack.i.bf16 %v5285_v52, %v5204_v25  ;;  %v5294_v4 = vld [vmem:[#allocation3 + $0x32] sm:$0xff] }
 0x1fc   : > { %v1985_v6 = vpop.f32.mrf.mxu0  ;;  %v5255_v61 = vld [vmem:[#allocation3 + $0x61] sm:$0xff] }
 0x1fd   : > { %2105 = vst.msk [vmem:[#allocation2 + $0x60] sm:$0xff] %vm1573_vm2, %v2073_v10  ;;  %v2076_v11 = vmax.f32 %v1994_v50, 0.0  ;;  %v1986_v32 = vadd.f32 %v5130_v37, %v1985_v6  ;;  %v5261_v46 = vld [vmem:[#allocation3 + $0x60] sm:$0xff] }
 0x1fe   : > { %v5276_v31 = vld [vmem:[#allocation3 + $0x62] sm:$0xff] }
 0x1ff   : > { %2108 = vst.msk [vmem:[#allocation2 + $0x78] sm:$0xff] %vm1573_vm2, %v2076_v11  ;;  %v2074_v62 = vmax.f32 %v1986_v32, 0.0 }
 0x201   : > { %2106 = vst.msk [vmem:[#allocation2 + $0x68] sm:$0xff] %vm1573_vm2, %v2074_v62  ;;  %v3979_v62 = vpack.i.bf16 %v5294_v4, %v5212_v40 }
 0x206   : > { %v2163_v17 = vld [vmem:[#allocation2 + $0x70] ss:$2 sm:$0xff]  ;;  %v2179_v12 = vld [vmem:[#allocation2 + $0x71] ss:$2 sm:$0xff] }
 0x207   : > { %v2199_v23 = vmax.f32 %v2163_v17, %v2179_v12 }
 0x208   : > { %v2131_v9 = vld [vmem:[#allocation2 + $0x60] ss:$2 sm:$0xff]  ;;  %v2147_v14 = vld [vmem:[#allocation2 + $0x61] ss:$2 sm:$0xff] }
 0x209   : > { %v2191_v30 = vmax.f32 %v2131_v9, %v2147_v14 }
 0x20b   : > { %v2207_v36 = vmax.f32 %v2191_v30, %v2199_v23 }
 0x20d   : > { %2237 = vst.msk [vmem:[#allocation3 + $0x41] sm:$0xff] %vm1573_vm2, %v2207_v36 }
 0x21e   : > { %v3234_v54 = vpop.f32.mrf.mxu1 }
 0x21f   : > { %v2039_v43 = vadd.f32 %v3234_v54, %v5130_v37 }
 0x220   : > { %v2030_v19 = vpop.f32.mrf.mxu1 }
 0x221   : > { %v2087_v8 = vmax.f32 %v2039_v43, 0.0  ;;  %v2031_v49 = vadd.f32 %v5130_v37, %v2030_v19 }
 0x222   : > { %v3235_v0 = vpop.f32.mrf.mxu1 }
 0x223   : > { %2119 = vst.msk [vmem:[#allocation2 + $0xd0] sm:$0xff] %vm1573_vm2, %v2087_v8  ;;  %v2085_v53 = vmax.f32 %v2031_v49, 0.0  ;;  %v2042_v24 = vadd.f32 %v3235_v0, %v5130_v37  ;;  %v2309_v49 = vld [vmem:[#allocation3 + $0x42] sm:$0xff] }
 0x224   : > { %v2033_v44 = vpop.f32.mrf.mxu1 }
 0x225   : > { %2117 = vst.msk [vmem:[#allocation2 + $0xc0] sm:$0xff] %vm1573_vm2, %v2085_v53  ;;  %v2088_v27 = vmax.f32 %v2042_v24, 0.0  ;;  %v2034_v18 = vadd.f32 %v5130_v37, %v2033_v44 }
 0x227   : > { %2120 = vst.msk [vmem:[#allocation2 + $0xd8] sm:$0xff] %vm1573_vm2, %v2088_v27  ;;  %v2086_v55 = vmax.f32 %v2034_v18, 0.0 }
 0x229   : > { %2118 = vst.msk [vmem:[#allocation2 + $0xc8] sm:$0xff] %vm1573_vm2, %v2086_v55 }
 0x22e   : > { %v2169_v1 = vld [vmem:[#allocation2 + $0xd0] ss:$2 sm:$0xff]  ;;  %v2185_v47 = vld [vmem:[#allocation2 + $0xd1] ss:$2 sm:$0xff] }
 0x22f   : > { %v2202_v13 = vmax.f32 %v2169_v1, %v2185_v47 }
 0x230   : > { %v2137_v21 = vld [vmem:[#allocation2 + $0xc0] ss:$2 sm:$0xff]  ;;  %v2153_v58 = vld [vmem:[#allocation2 + $0xc1] ss:$2 sm:$0xff] }
 0x231   : > { %v2194_v35 = vmax.f32 %v2137_v21, %v2153_v58 }
 0x233   : > { %v2210_v39 = vmax.f32 %v2194_v35, %v2202_v13 }
 0x235   : > { %2240 = vst.msk [vmem:[#allocation3 + $0x71] sm:$0xff] %vm1573_vm2, %v2210_v39 }
 0x237   : > { %v3226_v33 = vpop.f32.mrf.mxu0 }
 0x238   : > { %v2007_v41 = vadd.f32 %v3226_v33, %v5130_v37 }
 0x239   : > { %v1998_v60 = vpop.f32.mrf.mxu0 }
 0x23a   : > { %v2079_v56 = vmax.f32 %v2007_v41, 0.0  ;;  %v1999_v20 = vadd.f32 %v5130_v37, %v1998_v60 }
 0x23b   : > { %v3227_v29 = vpop.f32.mrf.mxu0 }
 0x23c   : > { %2111 = vst.msk [vmem:[#allocation2 + $0x90] sm:$0xff] %vm1573_vm2, %v2079_v56  ;;  %v2077_v45 = vmax.f32 %v1999_v20, 0.0  ;;  %v2010_v34 = vadd.f32 %v3227_v29, %v5130_v37  ;;  %v5259_v16 = vld [vmem:[#allocation3 + $0x71] sm:$0xff]  ;;  %v4092_v20 = vld [vmem:[%s5516_s3 + $0x20] ss:$0 sps:$4 sm:$0xff]  }
 0x23d   : > { %v5263_v51 = vld [vmem:[#allocation3 + $0x70] sm:$0xff]  ;;  %v2001_v26 = vpop.f32.mrf.mxu0  ;;  %v3954_v28 = vpack.i.bf16 %v5259_v16, %v5255_v61  ;;  %3266 = vmatprep.subr.msk.bf16.mxu1 %vm2723_vm11, %v4092_v20 }
 0x23e   : > { %v3964_v2 = vpack.i.bf16 %v5263_v51, %v5261_v46  ;;  %2109 = vst.msk [vmem:[#allocation2 + $0x80] sm:$0xff] %vm1573_vm2, %v2077_v45  ;;  %v2080_v59 = vmax.f32 %v2010_v34, 0.0  ;;  %v2002_v3 = vadd.f32 %v5130_v37, %v2001_v26  ;;  %v5271_v22 = vld [vmem:[#allocation3 + $0x72] sm:$0xff]  ;;  %v5338_v26 = vld [vmem:[#allocation3 + $0x40] sm:$0xff] }
 0x23f   : > { %3955 = vrot.lane.b32.xlu1 %v3954_v28, %s4113_s25  ;;  %v5280_v48 = vpack.i.bf16 %v5271_v22, %v5276_v31  ;;  %v2298_v45 = vld [vmem:[#allocation3 + $0x90] sm:$0xff]  ;;  %v4093_v34 = vld [vmem:[%s5516_s3 + $0x18] sm:$0xff]  }
 0x240   : > { %3965 = vrot.lane.b32.xlu0 %v3964_v2, %s4122_s16  ;;  %2112 = vst.msk [vmem:[#allocation2 + $0x98] sm:$0xff] %vm1573_vm2, %v2080_v59  ;;  %v2078_v57 = vmax.f32 %v2002_v3, 0.0  ;;  %v4019_v2 = vpack.i.bf16 %v5338_v26, %v5285_v52  ;;  %v2277_v59 = vld [vmem:[#allocation3 + $0x41] sm:$0xff] }
 0x241   : > { %v4095_v3 = vld [vmem:[%s5516_s3 + $0x8] sm:$0xff]  }
 0x242   : > { %2110 = vst.msk [vmem:[#allocation2 + $0x88] sm:$0xff] %vm1573_vm2, %v2078_v57  ;;  %v4096_v57 = vld [vmem:[%s5516_s3] sm:$0xff]  }
 0x243   : > { %3960 = vrot.lane.b32.xlu1 %v5280_v48, %s4115_s29 }
 0x244   : > { %3970 = vrot.lane.b32.xlu0 %v3954_v28, %s4123_s17  ;;  %v4094_v28 = vld [vmem:[%s5516_s3 + $0x10] sm:$0xff]  }
 0x247   : > { %v2165_v38 = vld [vmem:[#allocation2 + $0x90] ss:$2 sm:$0xff]  ;;  %v2181_v10 = vld [vmem:[#allocation2 + $0x91] ss:$2 sm:$0xff]  ;;  %3975 = vrot.lane.b32.xlu1 %v3974_v63, %s4113_s25 }
 0x248   : > { %3985 = vrot.lane.b32.xlu0 %v3984_v5, %s4122_s16  ;;  %v3238_v50 = vpop.f32.mrf.mxu1  ;;  %v2200_v15 = vmax.f32 %v2165_v38, %v2181_v10  ;;  %v2314_v38 = vld [vmem:[#allocation3 + $0x92] sm:$0xff]  ;;  %v3931_v10 = vpop.permute.xlu0 %3930 }
 0x249   : > { %v2133_v6 = vld [vmem:[#allocation2 + $0x80] ss:$2 sm:$0xff]  ;;  %v2149_v11 = vld [vmem:[#allocation2 + $0x81] ss:$2 sm:$0xff]  ;;  %v2055_v32 = vadd.f32 %v3238_v50, %v5130_v37 }
 0x24a   : > { %v2192_v17 = vmax.f32 %v2133_v6, %v2149_v11  ;;  %v2046_v12 = vpop.f32.mrf.mxu1 }
 0x24b   : > { %v2091_v9 = vmax.f32 %v2055_v32, 0.0  ;;  %v2047_v14 = vadd.f32 %v5130_v37, %v2046_v12  ;;  %3980 = vrot.lane.b32.xlu1 %v3979_v62, %s4115_s29  ;;  %v2242_v12 = vld [vmem:[#allocation3] sm:$0xff] }
 0x24c   : > { %3990 = vrot.lane.b32.xlu0 %v3974_v63, %s4123_s17  ;;  %v2208_v23 = vmax.f32 %v2192_v17, %v2200_v15  ;;  %v3239_v30 = vpop.f32.mrf.mxu1  ;;  %v2306_v63 = vld [vmem:[#allocation3 + $0x91] sm:$0xff]  ;;  %v3936_v50 = vpop.permute.xlu0 %3935  ;;  %v3932_v17 = vunpack.i.l.bf16 %v3931_v10 }
 0x24d   : > { %2123 = vst.msk [vmem:[#allocation2 + $0xf0] sm:$0xff] %vm1573_vm2, %v2091_v9  ;;  %v2089_v36 = vmax.f32 %v2047_v14, 0.0  ;;  %v2058_v54 = vadd.f32 %v3239_v30, %v5130_v37  ;;  %v3933_v9 = vunpack.i.h.bf16 %v3931_v10  ;;  %v3937_v14 = vunpack.i.l.bf16 %v3936_v50 }
 0x24e   : > { %2238 = vst.msk [vmem:[#allocation3 + $0x51] sm:$0xff] %vm1573_vm2, %v2208_v23  ;;  %v2049_v40 = vpop.f32.mrf.mxu1  ;;  %v3938_v30 = vunpack.i.h.bf16 %v3936_v50 }
 0x24f   : > { %2121 = vst.msk [vmem:[#allocation2 + $0xe0] sm:$0xff] %vm1573_vm2, %v2089_v36  ;;  %v2092_v43 = vmax.f32 %v2058_v54, 0.0  ;;  %v2050_v19 = vadd.f32 %v5130_v37, %v2049_v40  ;;  %v2571_v40 = vsel %vm1573_vm2, %v2242_v12, %v3932_v17 }
 0x250   : > { %3995 = vrot.lane.b32.xlu0 %v3979_v62, %s4124_s20  ;;  %v3941_v6 = vpop.permute.xlu0 %3940 }
 0x251   : > { %2124 = vst.msk [vmem:[#allocation2 + $0xf8] sm:$0xff] %vm1573_vm2, %v2092_v43  ;;  %v2090_v8 = vmax.f32 %v2050_v19, 0.0  ;;  %v3942_v36 = vunpack.i.l.bf16 %v3941_v6  ;;  %v3943_v54 = vunpack.i.h.bf16 %v3941_v6 }
 0x253   : > { %2122 = vst.msk [vmem:[#allocation2 + $0xe8] sm:$0xff] %vm1573_vm2, %v2090_v8  ;;  %v2572_v8 = vsel %vm1573_vm2, %v5202_v7, %v3933_v9 }
 0x254   : > { %v3946_v11 = vpop.permute.xlu0 %3945 }
 0x255   : > { %v2310_v0 = vld [vmem:[#allocation3 + $0x52] sm:$0xff]  ;;  %v3948_v43 = vunpack.i.h.bf16 %v3946_v11  ;;  %v3947_v19 = vunpack.i.l.bf16 %v3946_v11 }
 0x256   : > { %v4054_v53 = vpack.i.bf16 %v2310_v0, %v2309_v49  ;;  %v5313_v37 = vld [vmem:[#allocation3 + $0x50] sm:$0xff]  ;;  %v4074_v35 = vpack.i.bf16 %v5276_v31, %v2310_v0  ;;  %v4029_v31 = vpack.i.bf16 %v2309_v49, %v5294_v4  ;;  %v2579_v49 = vsel %vm1639_vm4, %v2571_v40, %v3937_v14 }
 0x257   : > { %v4064_v21 = vpack.i.bf16 %v5261_v46, %v5313_v37  ;;  %v2278_v58 = vld [vmem:[#allocation3 + $0x51] sm:$0xff] }
 0x258   : > { %v2171_v24 = vld [vmem:[#allocation2 + $0xf0] ss:$2 sm:$0xff]  ;;  %v2187_v44 = vld [vmem:[#allocation2 + $0xf1] ss:$2 sm:$0xff]  ;;  %4055 = vrot.lane.b32.xlu0 %v4054_v53, %s4124_s20  ;;  %v4069_v13 = vpack.i.bf16 %v5255_v61, %v2278_v58  ;;  %v2725_v61 = vsel %vm2723_vm11, %v4092_v20, 0  ;;  %v3951_v32 = vpop.permute.xlu0 %3950 }
 0x259   : > { %v2203_v55 = vmax.f32 %v2171_v24, %v2187_v44  ;;  %3241 = vmatpush3.bf16.msra.mxu1 %v2725_v61  ;;  %v3953_v0 = vunpack.i.h.bf16 %v3951_v32  ;;  %v2580_v44 = vsel %vm1639_vm4, %v2572_v8, %v3938_v30 }
 0x25a   : > { %v2139_v27 = vld [vmem:[#allocation2 + $0xe0] ss:$2 sm:$0xff]  ;;  %v2155_v18 = vld [vmem:[#allocation2 + $0xe1] ss:$2 sm:$0xff]  ;;  %3242 = vmatprep.subr.bf16.mxu1 %v4093_v34 }
 0x25b   : > { %v2195_v1 = vmax.f32 %v2139_v27, %v2155_v18  ;;  %v2587_v27 = vsel %vm1705_vm6, %v2579_v49, %v3942_v36 }
 0x25c   : > { %4060 = vrot.lane.b32.xlu0 %v4054_v53, %s4115_s29  ;;  %v3952_v53 = vunpack.i.l.bf16 %v3951_v32 }
 0x25d   : > { %v2211_v47 = vmax.f32 %v2195_v1, %v2203_v55  ;;  %3243 = vmatpush3.bf16.msra.mxu1 %v4093_v34  ;;  %v2588_v1 = vsel %vm1705_vm6, %v2580_v44, %v3943_v54 }
 0x25e   : > { %3244 = vmatprep.subr.bf16.mxu1 %v4094_v28  ;;  %v2596_v7 = vsel %vm1771_vm8, %v2588_v1, %v3948_v43 }
 0x25f   : > { %2241 = vst.msk [vmem:[#allocation3 + $0x81] sm:$0xff] %vm1573_vm2, %v2211_v47 }
 0x260   : > { %4065 = vrot.lane.b32.xlu0 %v4064_v21, %s4117_s10 }
 0x261   : > { %3245 = vmatpush3.bf16.msra.mxu1 %v4094_v28 }
 0x262   : > { %3246 = vmatprep.subr.bf16.mxu1 %v4095_v3 }
 0x264   : > { %4070 = vrot.lane.b32.xlu0 %v4069_v13, %s4119_s12 }
 0x265   : > { %3247 = vmatpush3.bf16.msra.mxu1 %v4095_v3 }
 0x266   : > { %v2273_v39 = vld [vmem:[#allocation3 + $0x80] sm:$0xff]  ;;  %3248 = vmatprep.subr.bf16.mxu1 %v4096_v57 }
 0x267   : > { %v3999_v33 = vpack.i.bf16 %v2273_v39, %v5263_v51  ;;  %v2281_v41 = vld [vmem:[#allocation3 + $0x81] sm:$0xff] }
 0x268   : > { %4075 = vrot.lane.b32.xlu0 %v4074_v35, %s4121_s15  ;;  %v4004_v60 = vpack.i.bf16 %v2281_v41, %v5259_v16  ;;  %v2289_v56 = vld [vmem:[#allocation3 + $0x82] sm:$0xff]  ;;  %v4014_v16 = vpack.i.bf16 %v2298_v45, %v2273_v39  ;;  %v4049_v5 = vpack.i.bf16 %v2306_v63, %v2281_v41  ;;  %v2605_v35 = vsel %vm2603_vm12, %v2596_v7, %v3953_v0 }
 0x269   : > { %4000 = vrot.lane.b32.xlu1 %v3999_v33, %s4117_s10  ;;  %v4009_v29 = vpack.i.bf16 %v2289_v56, %v5271_v22  ;;  %v4024_v22 = vpack.i.bf16 %v2277_v59, %v5283_v42  ;;  %3249 = vmatpush3.bf16.msra.mxu1 %v4096_v57  ;;  %v4039_v42 = vpack.i.bf16 %v2278_v58, %v2277_v59 }
 0x26a   : > { %v4084_v4 = vpack.i.bf16 %v2314_v38, %v2289_v56  ;;  %v2595_v58 = vsel %vm1771_vm8, %v2587_v27, %v3947_v19 }
 0x26b   : > { %v2604_v13 = vsel %vm2603_vm12, %v2595_v58, %v3952_v53 }
 0x26c   : > { %4080 = vrot.lane.b32.xlu0 %v5280_v48, %s4124_s20  ;;  %v4034_v48 = vpack.i.bf16 %v5313_v37, %v5338_v26 }
 0x26d   : > { %4005 = vrot.lane.b32.xlu1 %v4004_v60, %s4119_s12 }
 0x271   : > { %4010 = vrot.lane.b32.xlu1 %v4009_v29, %s4121_s15 }
 0x275   : > { %4015 = vrot.lane.b32.xlu1 %v4014_v16, %s4122_s16 }
 0x279   : > { %4020 = vrot.lane.b32.xlu1 %v4019_v2, %s4117_s10 }
 0x27d   : > { %4025 = vrot.lane.b32.xlu1 %v4024_v22, %s4119_s12 }
 0x281   : > { %4030 = vrot.lane.b32.xlu1 %v4029_v31, %s4121_s15 }
 0x285   : > { %4035 = vrot.lane.b32.xlu1 %v4034_v48, %s4122_s16 }
 0x289   : > { %4040 = vrot.lane.b32.xlu1 %v4039_v42, %s4123_s17 }
 0x28d   : > { %4045 = vrot.lane.b32.xlu1 %v4039_v42, %s4113_s25 }
 0x291   : > { %4050 = vrot.lane.b32.xlu1 %v4049_v5, %s4123_s17 }
 0x295   : > { %4085 = vrot.lane.b32.xlu1 %v4084_v4, %s4124_s20 }
 0x2b1   : > { %v3956_v34 = vpop.permute.xlu1 %3955 }
 0x2b2   : > { %v5364_v62 = vpop.permute.xlu0 %3965  ;;  %v3957_v4 = vunpack.i.l.bf16 %v3956_v34  ;;  %v3958_v10 = vunpack.i.h.bf16 %v3956_v34 }
 0x2b3   : > { %v3967_v30 = vunpack.i.l.bf16 %v5364_v62 }
 0x2b4   : > { %v2577_v14 = vsel %vm1573_vm2, %v5261_v46, %v3957_v4  ;;  %v2578_v54 = vsel %vm1573_vm2, %v5263_v51, %v3958_v10 }
 0x2b5   : > { %v3961_v28 = vpop.permute.xlu1 %3960 }
 0x2b6   : > { %v5366_v15 = vpop.permute.xlu0 %3970  ;;  %v3962_v50 = vunpack.i.l.bf16 %v3961_v28  ;;  %v3963_v6 = vunpack.i.h.bf16 %v3961_v28 }
 0x2b7   : > { %v3973_v43 = vunpack.i.h.bf16 %v5366_v15  ;;  %v3972_v19 = vunpack.i.l.bf16 %v5366_v15  ;;  %v3153_v15 = vld [vmem:[%s5517_s4] ss:$0 sm:$0xff] }
 0x2b8   : > { %v2585_v40 = vsel %vm1639_vm4, %v2577_v14, %v3962_v50  ;;  %v2586_v8 = vsel %vm1639_vm4, %v2578_v54, %v3963_v6 }
 0x2b9   : > { %v3976_v2 = vpop.permute.xlu1 %3975 }
 0x2ba   : > { %v3986_v23 = vpop.permute.xlu0 %3985  ;;  %v3977_v11 = vunpack.i.l.bf16 %v3976_v2  ;;  %v3978_v17 = vunpack.i.h.bf16 %v3976_v2 }
 0x2bb   : > { %v3988_v18 = vunpack.i.h.bf16 %v3986_v23  ;;  %v3987_v55 = vunpack.i.l.bf16 %v3986_v23  ;;  %v3968_v23 = vunpack.i.h.bf16 %v5364_v62 }
 0x2bc   : > { %v2573_v49 = vsel %vm1573_vm2, %v5204_v25, %v3977_v11  ;;  %v2574_v53 = vsel %vm1573_vm2, %v5285_v52, %v3978_v17 }
 0x2bd   : > { %v2613_v33 = vsel %vm2612_vm13, %v2604_v13, %v3987_v55  ;;  %v2614_v41 = vsel %vm2612_vm13, %v2605_v35, %v3988_v18  ;;  %v3981_v59 = vpop.permute.xlu1 %3980 }
 0x2be   : > { %v3991_v24 = vpop.permute.xlu0 %3990  ;;  %v3982_v12 = vunpack.i.l.bf16 %v3981_v59  ;;  %v3983_v36 = vunpack.i.h.bf16 %v3981_v59 }
 0x2bf   : > { %v3993_v47 = vunpack.i.h.bf16 %v3991_v24  ;;  %v3992_v21 = vunpack.i.l.bf16 %v3991_v24 }
 0x2c0   : > { %v2581_v24 = vsel %vm1639_vm4, %v2573_v49, %v3982_v12  ;;  %v2582_v18 = vsel %vm1639_vm4, %v2574_v53, %v3983_v36 }
 0x2c1   : > { %v2622_v20 = vsel %vm2621_vm14, %v2613_v33, %v3992_v21  ;;  %v2623_v29 = vsel %vm2621_vm14, %v2614_v41, %v3993_v47 }
 0x2c2   : > { %v3996_v39 = vpop.permute.xlu0 %3995 }
 0x2c3   : > { %v3998_v60 = vunpack.i.h.bf16 %v3996_v39  ;;  %v3997_v56 = vunpack.i.l.bf16 %v3996_v39 }
 0x2c5   : > { %v2631_v61 = vsel %vm2630_vm15, %v2622_v20, %v3997_v56  ;;  %v2632_v45 = vsel %vm2630_vm15, %v2623_v29, %v3998_v60 }
 0x2c6   : > { %v3170_v16 = vpack.c.bf16 %v2632_v45, %v2631_v61 }
 0x2c8   : > { %3250 = vmatprep.mubr.msk.bf16.mxu1 %vm2710_vm0, %v3170_v16 }
 0x2ca   : > { %v5390_v57 = vpop.permute.xlu0 %4055 }
 0x2cb   : > { %v4058_v55 = vunpack.i.h.bf16 %v5390_v57  ;;  %v4057_v25 = vunpack.i.l.bf16 %v5390_v57 }
 0x2ce   : > { %v5394_v48 = vpop.permute.xlu0 %4060 }
 0x2cf   : > { %v4063_v58 = vunpack.i.h.bf16 %v5394_v48  ;;  %v4062_v52 = vunpack.i.l.bf16 %v5394_v48 }
 0x2d2   : > { %v5398_v5 = vpop.permute.xlu0 %4065 }
 0x2d3   : > { %v4068_v35 = vunpack.i.h.bf16 %v5398_v5  ;;  %v4067_v41 = vunpack.i.l.bf16 %v5398_v5 }
 0x2d6   : > { %v5400_v32 = vpop.permute.xlu0 %4070 }
 0x2d7   : > { %v4073_v60 = vunpack.i.h.bf16 %v5400_v32  ;;  %v4072_v48 = vunpack.i.l.bf16 %v5400_v32 }
 0x2da   : > { %v5419_v1 = vpop.permute.xlu0 %4075 }
 0x2db   : > { %v5386_v3 = vpop.permute.xlu1 %4000  ;;  %v4077_v10 = vunpack.i.l.bf16 %v5419_v1 }
 0x2dc   : > { %v4003_v28 = vunpack.i.h.bf16 %v5386_v3  ;;  %v4002_v2 = vunpack.i.l.bf16 %v5386_v3 }
 0x2de   : > { %v4081_v5 = vpop.permute.xlu0 %4080  ;;  %v2594_v14 = vsel %vm1705_vm6, %v2586_v8, %v4003_v28  ;;  %v2593_v36 = vsel %vm1705_vm6, %v2585_v40, %v4002_v2 }
 0x2df   : > { %v5388_v22 = vpop.permute.xlu1 %4005  ;;  %v4083_v54 = vunpack.i.h.bf16 %v4081_v5  ;;  %v4082_v49 = vunpack.i.l.bf16 %v4081_v5 }
 0x2e0   : > { %v4008_v50 = vunpack.i.h.bf16 %v5388_v22  ;;  %v4007_v17 = vunpack.i.l.bf16 %v5388_v22 }
 0x2e3   : > { %v5392_v31 = vpop.permute.xlu1 %4010 }
 0x2e7   : > { %v5396_v42 = vpop.permute.xlu1 %4015 }
 0x2e8   : > { %v4018_v22 = vunpack.i.h.bf16 %v5396_v42  ;;  %v4017_v8 = vunpack.i.l.bf16 %v5396_v42 }
 0x2eb   : > { %v4021_v63 = vpop.permute.xlu1 %4020 }
 0x2ec   : > { %v4023_v46 = vunpack.i.h.bf16 %v4021_v63  ;;  %v4022_v0 = vunpack.i.l.bf16 %v4021_v63  ;;  %v4078_v63 = vunpack.i.h.bf16 %v5419_v1 }
 0x2ee   : > { %v2589_v39 = vsel %vm1705_vm6, %v2581_v24, %v4022_v0  ;;  %v2590_v33 = vsel %vm1705_vm6, %v2582_v18, %v4023_v46  ;;  %v4013_v46 = vunpack.i.h.bf16 %v5392_v31  ;;  %v4012_v0 = vunpack.i.l.bf16 %v5392_v31 }
 0x2ef   : > { %v4026_v38 = vpop.permute.xlu1 %4025  ;;  %v2602_v31 = vsel %vm1771_vm8, %v2594_v14, %v4008_v50 }
 0x2f0   : > { %v4028_v44 = vunpack.i.h.bf16 %v4026_v38  ;;  %v4027_v51 = vunpack.i.l.bf16 %v4026_v38 }
 0x2f2   : > { %v2597_v56 = vsel %vm1771_vm8, %v2589_v39, %v4027_v51  ;;  %v2598_v20 = vsel %vm1771_vm8, %v2590_v33, %v4028_v44 }
 0x2f3   : > { %v4031_v9 = vpop.permute.xlu1 %4030 }
 0x2f4   : > { %v4033_v47 = vunpack.i.h.bf16 %v4031_v9  ;;  %v4032_v21 = vunpack.i.l.bf16 %v4031_v9 }
 0x2f6   : > { %v2606_v61 = vsel %vm2603_vm12, %v2597_v56, %v4032_v21  ;;  %v2607_v45 = vsel %vm2603_vm12, %v2598_v20, %v4033_v47  ;;  %v2611_v21 = vsel %vm2603_vm12, %v2602_v31, %v4013_v46 }
 0x2f7   : > { %v4036_v27 = vpop.permute.xlu1 %4035 }
 0x2f8   : > { %v4038_v7 = vunpack.i.h.bf16 %v4036_v27  ;;  %v4037_v13 = vunpack.i.l.bf16 %v4036_v27  ;;  %v2601_v27 = vsel %vm1771_vm8, %v2593_v36, %v4007_v17 }
 0x2f9   : > { %v2610_v42 = vsel %vm2603_vm12, %v2601_v27, %v4012_v0 }
 0x2fa   : > { %v2615_v59 = vsel %vm2612_vm13, %v2606_v61, %v4037_v13  ;;  %v2616_v57 = vsel %vm2612_vm13, %v2607_v45, %v4038_v7  ;;  %v2619_v7 = vsel %vm2612_vm13, %v2610_v42, %v4017_v8  ;;  %v2620_v13 = vsel %vm2612_vm13, %v2611_v21, %v4018_v22 }
 0x2fb   : > { %v4041_v29 = vpop.permute.xlu1 %4040 }
 0x2fc   : > { %v4043_v34 = vunpack.i.h.bf16 %v4041_v29  ;;  %v4042_v16 = vunpack.i.l.bf16 %v4041_v29 }
 0x2fe   : > { %v2624_v38 = vsel %vm2621_vm14, %v2615_v59, %v4042_v16  ;;  %v2625_v4 = vsel %vm2621_vm14, %v2616_v57, %v4043_v34 }
 0x2ff   : > { %v2633_v6 = vsel %vm2630_vm15, %v2624_v38, %v4057_v25  ;;  %v2634_v3 = vsel %vm2630_vm15, %v2625_v4, %v4058_v55  ;;  %v4046_v11 = vpop.permute.xlu1 %4045 }
 0x300   : > { %v3171_v12 = vpack.c.bf16 %v2634_v3, %v2633_v6  ;;  %v4048_v32 = vunpack.i.h.bf16 %v4046_v11  ;;  %v4047_v9 = vunpack.i.l.bf16 %v4046_v11 }
 0x302   : > { %v2576_v53 = vsel %vm1573_vm2, %v5313_v37, %v4048_v32  ;;  %v2575_v24 = vsel %vm1573_vm2, %v5338_v26, %v4047_v9  ;;  %3251 = vmatmul.mubr.msk.bf16.vlgmr.msra.gmra.mxu1 %vm2710_vm0, %v3171_v12 }
 0x303   : > { %v2583_v40 = vsel %vm1639_vm4, %v2575_v24, %v4062_v52  ;;  %v2584_v44 = vsel %vm1639_vm4, %v2576_v53, %v4063_v58  ;;  %v4051_v51 = vpop.permute.xlu1 %4050 }
 0x304   : > { %v2591_v37 = vsel %vm1705_vm6, %v2583_v40, %v4067_v41  ;;  %v2592_v18 = vsel %vm1705_vm6, %v2584_v44, %v4068_v35  ;;  %v4053_v1 = vunpack.i.h.bf16 %v4051_v51  ;;  %v4052_v47 = vunpack.i.l.bf16 %v4051_v51 }
 0x305   : > { %v2599_v26 = vsel %vm1771_vm8, %v2591_v37, %v4072_v48  ;;  %v2600_v55 = vsel %vm1771_vm8, %v2592_v18, %v4073_v60 }
 0x306   : > { %v2608_v25 = vsel %vm2603_vm12, %v2599_v26, %v4077_v10  ;;  %v2609_v58 = vsel %vm2603_vm12, %v2600_v55, %v4078_v63  ;;  %v2628_v20 = vsel %vm2621_vm14, %v2619_v7, %v4052_v47  ;;  %v2629_v29 = vsel %vm2621_vm14, %v2620_v13, %v4053_v1 }
 0x307   : > { %v4086_v52 = vpop.permute.xlu1 %4085  ;;  %v2617_v35 = vsel %vm2612_vm13, %v2608_v25, %v3967_v30  ;;  %v2618_v39 = vsel %vm2612_vm13, %v2609_v58, %v3968_v23 }
 0x308   : > { %v4088_v33 = vunpack.i.h.bf16 %v4086_v52  ;;  %v4087_v41 = vunpack.i.l.bf16 %v4086_v52  ;;  %v2626_v60 = vsel %vm2621_vm14, %v2617_v35, %v3972_v19  ;;  %v2627_v56 = vsel %vm2621_vm14, %v2618_v39, %v3973_v43 }
 0x309   : > { %v2635_v30 = vsel %vm2630_vm15, %v2626_v60, %v4082_v49  ;;  %v2636_v62 = vsel %vm2630_vm15, %v2627_v56, %v4083_v54 }
 0x30a   : > { %v2637_v23 = vsel %vm2630_vm15, %v2628_v20, %v4087_v41  ;;  %v2638_v61 = vsel %vm2630_vm15, %v2629_v29, %v4088_v33  ;;  %v3172_v45 = vpack.c.bf16 %v2636_v62, %v2635_v30 }
 0x30b   : > { %v3173_v34 = vpack.c.bf16 %v2638_v61, %v2637_v23 }
 0x30c   : > { %3254 = vmatprep.mubr.msk.bf16.mxu1 %vm2710_vm0, %v3172_v45 }
 0x30d   : > { %3255 = vmatmul.mubr.msk.bf16.gmra.mxu1 %vm2710_vm0, %v3173_v34 }
 0x3c2   : > { %v3252_v43 = vpop.f32.mrf.mxu1 }
 0x3c3   : > { %v2770_v19 = vadd.f32 %v3252_v43, %v3153_v15 }
 0x3c4   : > { %v2761_v16 = vpop.f32.mrf.mxu1 }
 0x3c5   : > { %v2794_v28 = vmax.f32 %v2770_v19, 0.0  ;;  %v2762_v2 = vadd.f32 %v3153_v15, %v2761_v16 }
 0x3c6   : > { %v3253_v59 = vpop.f32.mrf.mxu1 }
 0x3c7   : > { %2802 = vst.msk [vmem:[#allocation4 + $0x10] sm:$0xff] %vm1639_vm4, %v2794_v28  ;;  %v2792_v57 = vmax.f32 %v2762_v2, 0.0  ;;  %v2773_v48 = vadd.f32 %v3253_v59, %v3153_v15 }
 0x3c8   : > { %v2764_v63 = vpop.f32.mrf.mxu1 }
 0x3c9   : > { %2800 = vst.msk [vmem:[#allocation4] sm:$0xff] %vm1639_vm4, %v2792_v57  ;;  %v2795_v5 = vmax.f32 %v2773_v48, 0.0  ;;  %v2765_v38 = vadd.f32 %v3153_v15, %v2764_v63 }
 0x3cb   : > { %2803 = vst.msk [vmem:[#allocation4 + $0x18] sm:$0xff] %vm1639_vm4, %v2795_v5  ;;  %v2793_v4 = vmax.f32 %v2765_v38, 0.0 }
 0x3cd   : > { %2801 = vst.msk [vmem:[#allocation4 + $0x8] sm:$0xff] %vm1639_vm4, %v2793_v4  ;;  %v3256_v10 = vpop.f32.mrf.mxu1 }
 0x3ce   : > { %v2786_v50 = vadd.f32 %v3256_v10, %v3153_v15  ;;  %v2810_v6 = vld [vmem:[#allocation4 + $0x10] ss:$2 sm:$0xf]  ;;  %v2818_v11 = vld [vmem:[#allocation4 + $0x11] ss:$2 sm:$0xf] }
 0x3cf   : > { %v2777_v3 = vpop.f32.mrf.mxu1  ;;  %v2840_v46 = vmax.f32 %v2810_v6, %v2818_v11 }
 0x3d0   : > { %v2808_v17 = vld [vmem:[#allocation4] ss:$2 sm:$0xf]  ;;  %v2778_v12 = vadd.f32 %v3153_v15, %v2777_v3  ;;  %v2816_v32 = vld [vmem:[#allocation4 + $0x1] ss:$2 sm:$0xf] }
 0x3d1   : > { %v2798_v9 = vmax.f32 %v2786_v50, 0.0  ;;  %v3257_v14 = vpop.f32.mrf.mxu1  ;;  %v2839_v44 = vmax.f32 %v2808_v17, %v2816_v32 }
 0x3d2   : > { %v2826_v36 = vld [vmem:[#allocation4 + $0x18] ss:$2 sm:$0xf]  ;;  %v2834_v54 = vld [vmem:[#allocation4 + $0x19] ss:$2 sm:$0xf]  ;;  %v2789_v49 = vadd.f32 %v3257_v14, %v3153_v15 }
 0x3d3   : > { %v2844_v0 = vmax.f32 %v2826_v36, %v2834_v54  ;;  %2806 = vst.msk [vmem:[#allocation4 + $0x30] sm:$0xff] %vm1639_vm4, %v2798_v9  ;;  %v2796_v53 = vmax.f32 %v2778_v12, 0.0  ;;  %v2780_v24 = vpop.f32.mrf.mxu1 }
 0x3d4   : > { %v2824_v22 = vld [vmem:[#allocation4 + $0x8] ss:$2 sm:$0xf]  ;;  %v2832_v8 = vld [vmem:[#allocation4 + $0x9] ss:$2 sm:$0xf]  ;;  %v2781_v40 = vadd.f32 %v3153_v15, %v2780_v24 }
 0x3d5   : > { %v2848_v51 = vmax.f32 %v2840_v46, %v2844_v0  ;;  %v2843_v27 = vmax.f32 %v2824_v22, %v2832_v8  ;;  %2804 = vst.msk [vmem:[#allocation4 + $0x20] sm:$0xff] %vm1639_vm4, %v2796_v53  ;;  %v2799_v31 = vmax.f32 %v2789_v49, 0.0 }
 0x3d6   : > { %v2797_v37 = vmax.f32 %v2781_v40, 0.0 }
 0x3d7   : > { %2853 = vst.msk [vmem:[%s224_s11 + $0x4] sm:$0xf] %vm2851_vm1, %v2848_v51  ;;  %v2847_v18 = vmax.f32 %v2839_v44, %v2843_v27 }
 0x3d8   : > { %2807 = vst.msk [vmem:[#allocation4 + $0x38] sm:$0xff] %vm1639_vm4, %v2799_v31  ;;  %2805 = vst.msk [vmem:[#allocation4 + $0x28] sm:$0xff] %vm1639_vm4, %v2797_v37 }
 0x3d9   : > { %2852 = vst.msk [vmem:[%s224_s11] sm:$0xf] %vm2851_vm1, %v2847_v18 }
 0x3da   : > { %v2814_v26 = vld [vmem:[#allocation4 + $0x30] ss:$2 sm:$0xf]  ;;  %v2822_v55 = vld [vmem:[#allocation4 + $0x31] ss:$2 sm:$0xf] }
 0x3db   : > { %v2842_v25 = vmax.f32 %v2814_v26, %v2822_v55 }
 0x3dc   : > { %v2812_v1 = vld [vmem:[#allocation4 + $0x20] ss:$2 sm:$0xf]  ;;  %v2820_v47 = vld [vmem:[#allocation4 + $0x21] ss:$2 sm:$0xf] }
 0x3dd   : > { %v2841_v52 = vmax.f32 %v2812_v1, %v2820_v47 }
 0x3df   : > { %v2830_v42 = vld [vmem:[#allocation4 + $0x38] ss:$2 sm:$0xf]  ;;  %v2838_v21 = vld [vmem:[#allocation4 + $0x39] ss:$2 sm:$0xf] }
 0x3e0   : > { %v2846_v58 = vmax.f32 %v2830_v42, %v2838_v21  ;;  %v2828_v7 = vld [vmem:[#allocation4 + $0x28] ss:$2 sm:$0xf]  ;;  %v2836_v13 = vld [vmem:[#allocation4 + $0x29] ss:$2 sm:$0xf] }
 0x3e1   : > { %v2845_v35 = vmax.f32 %v2828_v7, %v2836_v13 }
 0x3e2   : > { %v2850_v39 = vmax.f32 %v2842_v25, %v2846_v58 }
 0x3e3   : > { %v2849_v33 = vmax.f32 %v2841_v52, %v2845_v35 }
 0x3e4   : > { %2855 = vst.msk [vmem:[%s224_s11 + $0xc] sm:$0xf] %vm2851_vm1, %v2850_v39 }
 0x3e5   : > { %2854 = vst.msk [vmem:[%s224_s11 + $0x8] sm:$0xf] %vm2851_vm1, %v2849_v33 }
 0x3e6 PF: > { %s15_s18 = sadd.s32 1, %s4110_s18  }
 0x3e7   : > { %p12_p4 = scmp.ge.s32.totalorder %s15_s18, 4  }
 0x3e9   :  { %14 = sbr.rel (!%p12_p4) target bundleno = 1 (0x1), region = 120 }

</bundles_post_ra>
